<compile_context>
chip_gen: v7x
topology: tpu7x:2x2x1
jax: 0.10.0
libtpu: 0.0.40
codegen_flags: <defaults>
</compile_context>

<pallas_src>
import math

import jax
import jax.numpy as jnp
from jax.experimental import pallas as pl
from jax.experimental.pallas import tpu as pltpu


# ----------------------------- tiny BERT config ------------------------------
VOCAB = 512
TYPE_VOCAB = 2
MAX_POS = 64
HIDDEN = 128
NUM_HEADS = 2
HEAD_DIM = HIDDEN // NUM_HEADS
INTERMEDIATE = 256
NUM_LAYERS = 2
LN_EPS = 1e-12
QA_PAD = 128                          # lane-dense padding of the 2-logit head
ATT_SCALE = 1.0 / math.sqrt(HEAD_DIM)

# --- layout of the packed f32 bias / LayerNorm slab: [N_VEC_ROWS, VEC_W] ---
VEC_W = 3 * HIDDEN                    # 384 lanes (widest row: fused qkv bias)
ROW_EMB_G = 0
ROW_EMB_B = 1
ROWS_PER_LAYER = 8                    # bqkv, bo, ln1_g, ln1_b, b1, b2, ln2_g, ln2_b
ROW_LAYER0 = 2
ROW_QA_B = ROW_LAYER0 + ROWS_PER_LAYER * NUM_LAYERS
N_VEC_ROWS = ROW_QA_B + 1             # 19


# ------------------------------ kernel helpers --------------------------------
def _gelu(x):
    # TODO(synk): HF BERT default is exact erf-GELU; tanh approximation used here.
    c = math.sqrt(2.0 / math.pi)
    return 0.5 * x * (1.0 + jnp.tanh(c * (x + 0.044715 * x * x * x)))


def _layernorm(h, g, b):
    # One-pass: var = E[x^2] - mean^2 (two independent XLU reductions, no chain).
    mu = jnp.mean(h, axis=-1, keepdims=True)
    m2 = jnp.mean(h * h, axis=-1, keepdims=True)
    var = m2 - mu * mu
    return (h - mu) * jax.lax.rsqrt(var + LN_EPS) * g + b


def _bf16(x):
    return x.astype(jnp.bfloat16)


# ------------------------------ fused forward kernel --------------------------
def _fused_encoder_kernel(emb_ref, kmask_ref, wqkv_ref, wo_ref, w1_ref, w2_ref,
                          qa_w_ref, vec_ref, out_ref):
    # Per grid step (one example):
    #   emb:   [S, H] f32        kmask: [1, S] additive f32 key-padding mask
    #   wqkv:  [L, H, 3H] bf16 (q columns pre-scaled by 1/sqrt(Dh))
    #   wo:    [L, H, H] bf16    w1: [L, H, I] bf16    w2: [L, I, H] bf16
    #   qa_w:  [H, 128] bf16 (zero-padded)
    #   vec:   [N_VEC_ROWS, 3H] f32 slab of all biases / LayerNorm params
    #   out:   [S, 128] f32
    def vrow(r, width):                       # static row/lane slice -> [1, width]
        return vec_ref[r:r + 1, 0:width]

    x = _layernorm(emb_ref[...], vrow(ROW_EMB_G, HIDDEN), vrow(ROW_EMB_B, HIDDEN))
    add_mask = kmask_ref[...]                 # [1, S]

    for l in range(NUM_LAYERS):
        base = ROW_LAYER0 + l * ROWS_PER_LAYER
        xb = _bf16(x)

        # ---- fused QKV projection: one [S,H] x [H,3H] matmul per layer ----
        qkv = jnp.dot(xb, wqkv_ref[l],
                      preferred_element_type=jnp.float32) + vrow(base + 0, 3 * HIDDEN)
        q = qkv[:, 0:HIDDEN]
        k = qkv[:, HIDDEN:2 * HIDDEN]
        v = qkv[:, 2 * HIDDEN:3 * HIDDEN]

        # ---- per-head attention (scale already folded into q weights/bias) ----
        ctxs = []
        for h in range(NUM_HEADS):
            sl = slice(h * HEAD_DIM, (h + 1) * HEAD_DIM)
            s = jax.lax.dot_general(
                _bf16(q[:, sl]), _bf16(k[:, sl]), (((1,), (1,)), ((), ())),
                preferred_element_type=jnp.float32) + add_mask       # [S, S]
            s = s - jnp.max(s, axis=-1, keepdims=True)
            p = jnp.exp(s)
            p = p * pl.reciprocal(jnp.sum(p, axis=-1, keepdims=True), approx=True)
            ctxs.append(jnp.dot(_bf16(p), _bf16(v[:, sl]),
                                preferred_element_type=jnp.float32))  # [S, Dh]

        # ---- fused output projection over lane-concatenated contexts ----
        ctx = jnp.concatenate(ctxs, axis=-1)                          # [S, H]
        attn = jnp.dot(_bf16(ctx), wo_ref[l],
                       preferred_element_type=jnp.float32) + vrow(base + 1, HIDDEN)
        x = _layernorm(attn + x, vrow(base + 2, HIDDEN), vrow(base + 3, HIDDEN))

        # ---- FFN (+GELU) + residual + LN ----
        h1 = jnp.dot(_bf16(x), w1_ref[l],
                     preferred_element_type=jnp.float32) + vrow(base + 4, INTERMEDIATE)
        h1 = _gelu(h1)
        h2 = jnp.dot(_bf16(h1), w2_ref[l],
                     preferred_element_type=jnp.float32) + vrow(base + 5, HIDDEN)
        x = _layernorm(h2 + x, vrow(base + 6, HIDDEN), vrow(base + 7, HIDDEN))

    # ---- qa head: lane-dense padded output slab ----
    out_ref[...] = jnp.dot(_bf16(x), qa_w_ref[...],
                           preferred_element_type=jnp.float32) + vrow(ROW_QA_B, QA_PAD)


# ------------------------------ parameter init --------------------------------
def init_params(key):
    keys = iter(jax.random.split(key, 64))
    nrm = lambda shape: (0.02 * jax.random.normal(next(keys), shape)).astype(jnp.float32)

    params = {
        "word_emb": nrm((VOCAB, HIDDEN)),
        "pos_emb": nrm((MAX_POS, HIDDEN)),
        "type_emb": nrm((TYPE_VOCAB, HIDDEN)),
        "emb_ln_g": jnp.ones((HIDDEN,), jnp.float32),
        "emb_ln_b": jnp.zeros((HIDDEN,), jnp.float32),
        "layers": [],
        "qa_w": nrm((HIDDEN, 2)),
        "qa_b": jnp.zeros((2,), jnp.float32),
    }
    for _ in range(NUM_LAYERS):
        params["layers"].append({
            "wq": nrm((HIDDEN, HIDDEN)), "bq": jnp.zeros((HIDDEN,), jnp.float32),
            "wk": nrm((HIDDEN, HIDDEN)), "bk": jnp.zeros((HIDDEN,), jnp.float32),
            "wv": nrm((HIDDEN, HIDDEN)), "bv": jnp.zeros((HIDDEN,), jnp.float32),
            "wo": nrm((HIDDEN, HIDDEN)), "bo": jnp.zeros((HIDDEN,), jnp.float32),
            "ln1_g": jnp.ones((HIDDEN,), jnp.float32), "ln1_b": jnp.zeros((HIDDEN,), jnp.float32),
            "w1": nrm((HIDDEN, INTERMEDIATE)), "b1": jnp.zeros((INTERMEDIATE,), jnp.float32),
            "w2": nrm((INTERMEDIATE, HIDDEN)), "b2": jnp.zeros((HIDDEN,), jnp.float32),
            "ln2_g": jnp.ones((HIDDEN,), jnp.float32), "ln2_b": jnp.zeros((HIDDEN,), jnp.float32),
        })
    return params


def pack_params(params):
    """Fuse QKV columns, fold the attention scale into q (f32, pre-bf16-cast),
    cast matmul weights to bf16, and pack all small f32 vectors into one slab."""
    L = params["layers"]

    wqkv = jnp.stack([
        jnp.concatenate([lp["wq"] * ATT_SCALE, lp["wk"], lp["wv"]], axis=1)
        for lp in L]).astype(jnp.bfloat16)                           # [L, H, 3H]
    wo = jnp.stack([lp["wo"] for lp in L]).astype(jnp.bfloat16)       # [L, H, H]
    w1 = jnp.stack([lp["w1"] for lp in L]).astype(jnp.bfloat16)       # [L, H, I]
    w2 = jnp.stack([lp["w2"] for lp in L]).astype(jnp.bfloat16)       # [L, I, H]
    qa_w = jnp.pad(params["qa_w"], ((0, 0), (0, QA_PAD - 2))).astype(jnp.bfloat16)

    def row(v):
        v = v.astype(jnp.float32)
        return jnp.pad(v, (0, VEC_W - v.shape[0])).reshape(1, VEC_W)

    rows = [row(params["emb_ln_g"]), row(params["emb_ln_b"])]
    for lp in L:
        rows += [
            row(jnp.concatenate([lp["bq"] * ATT_SCALE, lp["bk"], lp["bv"]])),
            row(lp["bo"]),
            row(lp["ln1_g"]), row(lp["ln1_b"]),
            row(lp["b1"]), row(lp["b2"]),
            row(lp["ln2_g"]), row(lp["ln2_b"]),
        ]
    rows.append(row(jnp.pad(params["qa_b"], (0, QA_PAD - 2))))
    vec = jnp.concatenate(rows, axis=0)                               # [N_VEC_ROWS, 3H]
    assert vec.shape == (N_VEC_ROWS, VEC_W)

    return {
        "word_emb": params["word_emb"],
        "pos_emb": params["pos_emb"],
        "type_emb": params["type_emb"],
        "wqkv": wqkv, "wo": wo, "w1": w1, "w2": w2,
        "qa_w": qa_w, "vec": vec,
    }


# ------------------------------- forward pass ----------------------------------
@jax.jit
def qa_model_forward(packed, input_ids, attention_mask, token_type_ids):
    B, S = input_ids.shape

    # --- embeddings (gathers are plain-JAX glue) ---
    positions = jnp.arange(S)
    emb = (packed["word_emb"][input_ids]
           + packed["pos_emb"][positions][None, :, :]
           + packed["type_emb"][token_type_ids]).astype(jnp.float32)   # [B, S, H]

    # --- additive key-padding mask per example; cross-example attention is
    #     structurally excluded by the per-example grid ---
    kmask = jnp.where(attention_mask != 0, 0.0, -1e9).astype(jnp.float32)
    kmask = kmask.reshape(B, 1, S)                                      # [B, 1, S]

    weight_specs = [
        pl.BlockSpec((NUM_LAYERS, HIDDEN, 3 * HIDDEN), lambda b: (0, 0, 0)),   # wqkv
        pl.BlockSpec((NUM_LAYERS, HIDDEN, HIDDEN), lambda b: (0, 0, 0)),       # wo
        pl.BlockSpec((NUM_LAYERS, HIDDEN, INTERMEDIATE), lambda b: (0, 0, 0)), # w1
        pl.BlockSpec((NUM_LAYERS, INTERMEDIATE, HIDDEN), lambda b: (0, 0, 0)), # w2
        pl.BlockSpec((HIDDEN, QA_PAD), lambda b: (0, 0)),                      # qa_w
        pl.BlockSpec((N_VEC_ROWS, VEC_W), lambda b: (0, 0)),                   # vec slab
    ]

    logits_padded = pl.pallas_call(
        _fused_encoder_kernel,
        out_shape=jax.ShapeDtypeStruct((B, S, QA_PAD), jnp.float32),
        grid=(B,),
        in_specs=[pl.BlockSpec((None, S, HIDDEN), lambda b: (b, 0, 0)),   # emb
                  pl.BlockSpec((None, 1, S), lambda b: (b, 0, 0))]        # key mask
                 + weight_specs,
        out_specs=pl.BlockSpec((None, S, QA_PAD), lambda b: (b, 0, 0)),
        compiler_params=pltpu.CompilerParams(
            dimension_semantics=("parallel",)),   # v7x: 2 TCs split the batch
    )(emb, kmask,
      packed["wqkv"], packed["wo"], packed["w1"], packed["w2"],
      packed["qa_w"], packed["vec"])

    logits = logits_padded[:, :, :2]
    return logits[..., 0], logits[..., 1]


# ----------------------------------- main --------------------------------------
if __name__ == "__main__":
    key = jax.random.PRNGKey(0)
    pkey, ikey = jax.random.split(key)

    packed = pack_params(init_params(pkey))

    B, S = 2, 16
    input_ids = jax.random.randint(ikey, (B, S), 0, VOCAB, dtype=jnp.int32)
    attention_mask = jnp.ones((B, S), jnp.int32).at[1, 12:].set(0)   # pad tail of 2nd example
    token_type_ids = jnp.zeros((B, S), jnp.int32).at[:, 8:].set(1)   # question / context split

    start_logits, end_logits = qa_model_forward(packed, input_ids, attention_mask, token_type_ids)
    jax.block_until_ready((start_logits, end_logits))

    assert start_logits.shape == (B, S) and end_logits.shape == (B, S)
    assert jnp.all(jnp.isfinite(start_logits)) and jnp.all(jnp.isfinite(end_logits))
    print("KERNEL_OK")
</pallas_src>

<mosaic_0001>
module attributes {stable_mosaic.version = 11 : i64} {
  func.func @_fused_encoder_kernel(%arg0: i32, %arg1: memref<1x16x128xf32, #tpu.memory_space<vmem>>, %arg2: memref<1x1x16xf32, #tpu.memory_space<vmem>>, %arg3: memref<2x128x384xbf16, #tpu.memory_space<vmem>>, %arg4: memref<2x128x128xbf16, #tpu.memory_space<vmem>>, %arg5: memref<2x128x256xbf16, #tpu.memory_space<vmem>>, %arg6: memref<2x256x128xbf16, #tpu.memory_space<vmem>>, %arg7: memref<128x128xbf16, #tpu.memory_space<vmem>>, %arg8: memref<19x384xf32, #tpu.memory_space<vmem>>, %arg9: memref<1x16x128xf32, #tpu.memory_space<vmem>>) attributes {dimension_semantics = [#tpu.dimension_semantics<parallel>], iteration_bounds = array<i64: 2>, scalar_prefetch = 0 : i64, scratch_operands = 0 : i64, tpu.core_type = #tpu.core_type<tc>, window_params = [{transform_indices = @transform_0, window_bounds = array<i64: 1, 16, 128>}, {transform_indices = @transform_1, window_bounds = array<i64: 1, 1, 16>}, {pipeline_mode = #tpu.pipeline_mode<synchronous>, transform_indices = @transform_2, window_bounds = array<i64: 2, 128, 384>}, {pipeline_mode = #tpu.pipeline_mode<synchronous>, transform_indices = @transform_3, window_bounds = array<i64: 2, 128, 128>}, {pipeline_mode = #tpu.pipeline_mode<synchronous>, transform_indices = @transform_4, window_bounds = array<i64: 2, 128, 256>}, {pipeline_mode = #tpu.pipeline_mode<synchronous>, transform_indices = @transform_5, window_bounds = array<i64: 2, 256, 128>}, {pipeline_mode = #tpu.pipeline_mode<synchronous>, transform_indices = @transform_6, window_bounds = array<i64: 128, 128>}, {pipeline_mode = #tpu.pipeline_mode<synchronous>, transform_indices = @transform_7, window_bounds = array<i64: 19, 384>}, {transform_indices = @transform_8, window_bounds = array<i64: 1, 16, 128>}]} {
    %c0 = arith.constant 0 : index
    %c0_0 = arith.constant 0 : index
    %c0_1 = arith.constant 0 : index
    %0 = vector.load %arg1[%c0, %c0_0, %c0_1] : memref<1x16x128xf32, #tpu.memory_space<vmem>>, vector<1x16x128xf32>
    %1 = vector.shape_cast %0 : vector<1x16x128xf32> to vector<16x128xf32>
    %c0_2 = arith.constant 0 : index
    %c0_3 = arith.constant 0 : index
    %2 = vector.load %arg8[%c0_2, %c0_3] : memref<19x384xf32, #tpu.memory_space<vmem>>, vector<1x128xf32>
    %c1 = arith.constant 1 : index
    %c0_4 = arith.constant 0 : index
    %3 = vector.load %arg8[%c1, %c0_4] : memref<19x384xf32, #tpu.memory_space<vmem>>, vector<1x128xf32>
    %cst = arith.constant dense<0.000000e+00> : vector<16xf32>
    %4 = vector.multi_reduction <add>, %1, %cst [1] : vector<16x128xf32> to vector<16xf32>
    %5 = vector.shape_cast %4 : vector<16xf32> to vector<16x1xf32>
    %cst_5 = arith.constant 1.280000e+02 : f32
    %6 = vector.broadcast %cst_5 : f32 to vector<16x1xf32>
    %7 = arith.divf %5, %6 : vector<16x1xf32>
    %8 = arith.mulf %1, %1 : vector<16x128xf32>
    %cst_6 = arith.constant dense<0.000000e+00> : vector<16xf32>
    %9 = vector.multi_reduction <add>, %8, %cst_6 [1] : vector<16x128xf32> to vector<16xf32>
    %10 = vector.shape_cast %9 : vector<16xf32> to vector<16x1xf32>
    %cst_7 = arith.constant 1.280000e+02 : f32
    %11 = vector.broadcast %cst_7 : f32 to vector<16x1xf32>
    %12 = arith.divf %10, %11 : vector<16x1xf32>
    %13 = arith.mulf %7, %7 : vector<16x1xf32>
    %14 = arith.subf %12, %13 : vector<16x1xf32>
    %15 = vector.broadcast %7 : vector<16x1xf32> to vector<16x128xf32>
    %16 = arith.subf %1, %15 : vector<16x128xf32>
    %cst_8 = arith.constant 9.99999996E-13 : f32
    %17 = vector.broadcast %cst_8 : f32 to vector<16x1xf32>
    %18 = arith.addf %14, %17 : vector<16x1xf32>
    %19 = math.rsqrt %18 : vector<16x1xf32>
    %20 = vector.broadcast %19 : vector<16x1xf32> to vector<16x128xf32>
    %21 = arith.mulf %16, %20 : vector<16x128xf32>
    %22 = vector.broadcast %2 : vector<1x128xf32> to vector<16x128xf32>
    %23 = arith.mulf %21, %22 : vector<16x128xf32>
    %24 = vector.broadcast %3 : vector<1x128xf32> to vector<16x128xf32>
    %25 = arith.addf %23, %24 : vector<16x128xf32>
    %c0_9 = arith.constant 0 : index
    %c0_10 = arith.constant 0 : index
    %c0_11 = arith.constant 0 : index
    %26 = vector.load %arg2[%c0_9, %c0_10, %c0_11] : memref<1x1x16xf32, #tpu.memory_space<vmem>>, vector<1x1x16xf32>
    %27 = vector.shape_cast %26 : vector<1x1x16xf32> to vector<1x16xf32>
    %28 = arith.truncf %25 : vector<16x128xf32> to vector<16x128xbf16>
    %c0_12 = arith.constant 0 : index
    %c0_13 = arith.constant 0 : index
    %c0_14 = arith.constant 0 : index
    %29 = vector.load %arg3[%c0_12, %c0_13, %c0_14] : memref<2x128x384xbf16, #tpu.memory_space<vmem>>, vector<1x128x384xbf16>
    %30 = vector.shape_cast %29 : vector<1x128x384xbf16> to vector<128x384xbf16>
    %cst_15 = arith.constant dense<0.000000e+00> : vector<16x384xf32>
    %31 = tpu.matmul %28, %30, %cst_15 {dimension_numbers = #tpu.dot_dimension_numbers<[1], [0], [0], [1], [0, 0, 1, 1], [], []>} : vector<16x128xbf16>, vector<128x384xbf16>, vector<16x384xf32> -> vector<16x384xf32>
    %c2 = arith.constant 2 : index
    %c0_16 = arith.constant 0 : index
    %32 = vector.load %arg8[%c2, %c0_16] : memref<19x384xf32, #tpu.memory_space<vmem>>, vector<1x384xf32>
    %33 = vector.broadcast %32 : vector<1x384xf32> to vector<16x384xf32>
    %34 = arith.addf %31, %33 : vector<16x384xf32>
    %35 = vector.extract_strided_slice %34 {offsets = [0, 0], sizes = [16, 128], strides = [1, 1]} : vector<16x384xf32> to vector<16x128xf32>
    %36 = vector.extract_strided_slice %34 {offsets = [0, 128], sizes = [16, 128], strides = [1, 1]} : vector<16x384xf32> to vector<16x128xf32>
    %37 = vector.extract_strided_slice %34 {offsets = [0, 256], sizes = [16, 128], strides = [1, 1]} : vector<16x384xf32> to vector<16x128xf32>
    %38 = vector.extract_strided_slice %35 {offsets = [0, 0], sizes = [16, 64], strides = [1, 1]} : vector<16x128xf32> to vector<16x64xf32>
    %39 = arith.truncf %38 : vector<16x64xf32> to vector<16x64xbf16>
    %40 = vector.extract_strided_slice %36 {offsets = [0, 0], sizes = [16, 64], strides = [1, 1]} : vector<16x128xf32> to vector<16x64xf32>
    %41 = arith.truncf %40 : vector<16x64xf32> to vector<16x64xbf16>
    %cst_17 = arith.constant dense<0.000000e+00> : vector<16x16xf32>
    %42 = tpu.matmul %39, %41, %cst_17 {dimension_numbers = #tpu.dot_dimension_numbers<[1], [1], [0], [0], [0, 0, 1, 0], [], []>} : vector<16x64xbf16>, vector<16x64xbf16>, vector<16x16xf32> -> vector<16x16xf32>
    %43 = vector.broadcast %27 : vector<1x16xf32> to vector<16x16xf32>
    %44 = arith.addf %42, %43 : vector<16x16xf32>
    %cst_18 = arith.constant dense<0xFF800000> : vector<16xf32>
    %45 = vector.multi_reduction <maximumf>, %44, %cst_18 [1] : vector<16x16xf32> to vector<16xf32>
    %46 = vector.shape_cast %45 : vector<16xf32> to vector<16x1xf32>
    %47 = vector.broadcast %46 : vector<16x1xf32> to vector<16x16xf32>
    %48 = arith.subf %44, %47 : vector<16x16xf32>
    %49 = math.exp %48 : vector<16x16xf32>
    %cst_19 = arith.constant dense<0.000000e+00> : vector<16xf32>
    %50 = vector.multi_reduction <add>, %49, %cst_19 [1] : vector<16x16xf32> to vector<16xf32>
    %51 = vector.shape_cast %50 : vector<16xf32> to vector<16x1xf32>
    %52 = tpu.reciprocal %51 {approx = true} : vector<16x1xf32> -> vector<16x1xf32>
    %53 = vector.broadcast %52 : vector<16x1xf32> to vector<16x16xf32>
    %54 = arith.mulf %49, %53 : vector<16x16xf32>
    %55 = arith.truncf %54 : vector<16x16xf32> to vector<16x16xbf16>
    %56 = vector.extract_strided_slice %37 {offsets = [0, 0], sizes = [16, 64], strides = [1, 1]} : vector<16x128xf32> to vector<16x64xf32>
    %57 = arith.truncf %56 : vector<16x64xf32> to vector<16x64xbf16>
    %cst_20 = arith.constant dense<0.000000e+00> : vector<16x64xf32>
    %58 = tpu.matmul %55, %57, %cst_20 {dimension_numbers = #tpu.dot_dimension_numbers<[1], [0], [0], [1], [0, 0, 1, 1], [], []>} : vector<16x16xbf16>, vector<16x64xbf16>, vector<16x64xf32> -> vector<16x64xf32>
    %59 = vector.extract_strided_slice %35 {offsets = [0, 64], sizes = [16, 64], strides = [1, 1]} : vector<16x128xf32> to vector<16x64xf32>
    %60 = arith.truncf %59 : vector<16x64xf32> to vector<16x64xbf16>
    %61 = vector.extract_strided_slice %36 {offsets = [0, 64], sizes = [16, 64], strides = [1, 1]} : vector<16x128xf32> to vector<16x64xf32>
    %62 = arith.truncf %61 : vector<16x64xf32> to vector<16x64xbf16>
    %cst_21 = arith.constant dense<0.000000e+00> : vector<16x16xf32>
    %63 = tpu.matmul %60, %62, %cst_21 {dimension_numbers = #tpu.dot_dimension_numbers<[1], [1], [0], [0], [0, 0, 1, 0], [], []>} : vector<16x64xbf16>, vector<16x64xbf16>, vector<16x16xf32> -> vector<16x16xf32>
    %64 = vector.broadcast %27 : vector<1x16xf32> to vector<16x16xf32>
    %65 = arith.addf %63, %64 : vector<16x16xf32>
    %cst_22 = arith.constant dense<0xFF800000> : vector<16xf32>
    %66 = vector.multi_reduction <maximumf>, %65, %cst_22 [1] : vector<16x16xf32> to vector<16xf32>
    %67 = vector.shape_cast %66 : vector<16xf32> to vector<16x1xf32>
    %68 = vector.broadcast %67 : vector<16x1xf32> to vector<16x16xf32>
    %69 = arith.subf %65, %68 : vector<16x16xf32>
    %70 = math.exp %69 : vector<16x16xf32>
    %cst_23 = arith.constant dense<0.000000e+00> : vector<16xf32>
    %71 = vector.multi_reduction <add>, %70, %cst_23 [1] : vector<16x16xf32> to vector<16xf32>
    %72 = vector.shape_cast %71 : vector<16xf32> to vector<16x1xf32>
    %73 = tpu.reciprocal %72 {approx = true} : vector<16x1xf32> -> vector<16x1xf32>
    %74 = vector.broadcast %73 : vector<16x1xf32> to vector<16x16xf32>
    %75 = arith.mulf %70, %74 : vector<16x16xf32>
    %76 = arith.truncf %75 : vector<16x16xf32> to vector<16x16xbf16>
    %77 = vector.extract_strided_slice %37 {offsets = [0, 64], sizes = [16, 64], strides = [1, 1]} : vector<16x128xf32> to vector<16x64xf32>
    %78 = arith.truncf %77 : vector<16x64xf32> to vector<16x64xbf16>
    %cst_24 = arith.constant dense<0.000000e+00> : vector<16x64xf32>
    %79 = tpu.matmul %76, %78, %cst_24 {dimension_numbers = #tpu.dot_dimension_numbers<[1], [0], [0], [1], [0, 0, 1, 1], [], []>} : vector<16x16xbf16>, vector<16x64xbf16>, vector<16x64xf32> -> vector<16x64xf32>
    %80 = tpu.concatenate %58, %79 in 1 : vector<16x64xf32>, vector<16x64xf32> -> vector<16x128xf32>
    %81 = arith.truncf %80 : vector<16x128xf32> to vector<16x128xbf16>
    %c0_25 = arith.constant 0 : index
    %c0_26 = arith.constant 0 : index
    %c0_27 = arith.constant 0 : index
    %82 = vector.load %arg4[%c0_25, %c0_26, %c0_27] : memref<2x128x128xbf16, #tpu.memory_space<vmem>>, vector<1x128x128xbf16>
    %83 = vector.shape_cast %82 : vector<1x128x128xbf16> to vector<128x128xbf16>
    %cst_28 = arith.constant dense<0.000000e+00> : vector<16x128xf32>
    %84 = tpu.matmul %81, %83, %cst_28 {dimension_numbers = #tpu.dot_dimension_numbers<[1], [0], [0], [1], [0, 0, 1, 1], [], []>} : vector<16x128xbf16>, vector<128x128xbf16>, vector<16x128xf32> -> vector<16x128xf32>
    %c3 = arith.constant 3 : index
    %c0_29 = arith.constant 0 : index
    %85 = vector.load %arg8[%c3, %c0_29] : memref<19x384xf32, #tpu.memory_space<vmem>>, vector<1x128xf32>
    %86 = vector.broadcast %85 : vector<1x128xf32> to vector<16x128xf32>
    %87 = arith.addf %84, %86 : vector<16x128xf32>
    %88 = arith.addf %87, %25 : vector<16x128xf32>
    %c4 = arith.constant 4 : index
    %c0_30 = arith.constant 0 : index
    %89 = vector.load %arg8[%c4, %c0_30] : memref<19x384xf32, #tpu.memory_space<vmem>>, vector<1x128xf32>
    %c5 = arith.constant 5 : index
    %c0_31 = arith.constant 0 : index
    %90 = vector.load %arg8[%c5, %c0_31] : memref<19x384xf32, #tpu.memory_space<vmem>>, vector<1x128xf32>
    %cst_32 = arith.constant dense<0.000000e+00> : vector<16xf32>
    %91 = vector.multi_reduction <add>, %88, %cst_32 [1] : vector<16x128xf32> to vector<16xf32>
    %92 = vector.shape_cast %91 : vector<16xf32> to vector<16x1xf32>
    %cst_33 = arith.constant 1.280000e+02 : f32
    %93 = vector.broadcast %cst_33 : f32 to vector<16x1xf32>
    %94 = arith.divf %92, %93 : vector<16x1xf32>
    %95 = arith.mulf %88, %88 : vector<16x128xf32>
    %cst_34 = arith.constant dense<0.000000e+00> : vector<16xf32>
    %96 = vector.multi_reduction <add>, %95, %cst_34 [1] : vector<16x128xf32> to vector<16xf32>
    %97 = vector.shape_cast %96 : vector<16xf32> to vector<16x1xf32>
    %cst_35 = arith.constant 1.280000e+02 : f32
    %98 = vector.broadcast %cst_35 : f32 to vector<16x1xf32>
    %99 = arith.divf %97, %98 : vector<16x1xf32>
    %100 = arith.mulf %94, %94 : vector<16x1xf32>
    %101 = arith.subf %99, %100 : vector<16x1xf32>
    %102 = vector.broadcast %94 : vector<16x1xf32> to vector<16x128xf32>
    %103 = arith.subf %88, %102 : vector<16x128xf32>
    %cst_36 = arith.constant 9.99999996E-13 : f32
    %104 = vector.broadcast %cst_36 : f32 to vector<16x1xf32>
    %105 = arith.addf %101, %104 : vector<16x1xf32>
    %106 = math.rsqrt %105 : vector<16x1xf32>
    %107 = vector.broadcast %106 : vector<16x1xf32> to vector<16x128xf32>
    %108 = arith.mulf %103, %107 : vector<16x128xf32>
    %109 = vector.broadcast %89 : vector<1x128xf32> to vector<16x128xf32>
    %110 = arith.mulf %108, %109 : vector<16x128xf32>
    %111 = vector.broadcast %90 : vector<1x128xf32> to vector<16x128xf32>
    %112 = arith.addf %110, %111 : vector<16x128xf32>
    %113 = arith.truncf %112 : vector<16x128xf32> to vector<16x128xbf16>
    %c0_37 = arith.constant 0 : index
    %c0_38 = arith.constant 0 : index
    %c0_39 = arith.constant 0 : index
    %114 = vector.load %arg5[%c0_37, %c0_38, %c0_39] : memref<2x128x256xbf16, #tpu.memory_space<vmem>>, vector<1x128x256xbf16>
    %115 = vector.shape_cast %114 : vector<1x128x256xbf16> to vector<128x256xbf16>
    %cst_40 = arith.constant dense<0.000000e+00> : vector<16x256xf32>
    %116 = tpu.matmul %113, %115, %cst_40 {dimension_numbers = #tpu.dot_dimension_numbers<[1], [0], [0], [1], [0, 0, 1, 1], [], []>} : vector<16x128xbf16>, vector<128x256xbf16>, vector<16x256xf32> -> vector<16x256xf32>
    %c6 = arith.constant 6 : index
    %c0_41 = arith.constant 0 : index
    %117 = vector.load %arg8[%c6, %c0_41] : memref<19x384xf32, #tpu.memory_space<vmem>>, vector<1x256xf32>
    %118 = vector.broadcast %117 : vector<1x256xf32> to vector<16x256xf32>
    %119 = arith.addf %116, %118 : vector<16x256xf32>
    %cst_42 = arith.constant 5.000000e-01 : f32
    %120 = vector.broadcast %cst_42 : f32 to vector<16x256xf32>
    %121 = arith.mulf %120, %119 : vector<16x256xf32>
    %cst_43 = arith.constant 4.471500e-02 : f32
    %122 = vector.broadcast %cst_43 : f32 to vector<16x256xf32>
    %123 = arith.mulf %122, %119 : vector<16x256xf32>
    %124 = arith.mulf %123, %119 : vector<16x256xf32>
    %125 = arith.mulf %124, %119 : vector<16x256xf32>
    %126 = arith.addf %119, %125 : vector<16x256xf32>
    %cst_44 = arith.constant 0.797884583 : f32
    %127 = vector.broadcast %cst_44 : f32 to vector<16x256xf32>
    %128 = arith.mulf %127, %126 : vector<16x256xf32>
    %129 = math.tanh %128 : vector<16x256xf32>
    %cst_45 = arith.constant 1.000000e+00 : f32
    %130 = vector.broadcast %cst_45 : f32 to vector<16x256xf32>
    %131 = arith.addf %130, %129 : vector<16x256xf32>
    %132 = arith.mulf %121, %131 : vector<16x256xf32>
    %133 = arith.truncf %132 : vector<16x256xf32> to vector<16x256xbf16>
    %c0_46 = arith.constant 0 : index
    %c0_47 = arith.constant 0 : index
    %c0_48 = arith.constant 0 : index
    %134 = vector.load %arg6[%c0_46, %c0_47, %c0_48] : memref<2x256x128xbf16, #tpu.memory_space<vmem>>, vector<1x256x128xbf16>
    %135 = vector.shape_cast %134 : vector<1x256x128xbf16> to vector<256x128xbf16>
    %cst_49 = arith.constant dense<0.000000e+00> : vector<16x128xf32>
    %136 = tpu.matmul %133, %135, %cst_49 {dimension_numbers = #tpu.dot_dimension_numbers<[1], [0], [0], [1], [0, 0, 1, 1], [], []>} : vector<16x256xbf16>, vector<256x128xbf16>, vector<16x128xf32> -> vector<16x128xf32>
    %c7 = arith.constant 7 : index
    %c0_50 = arith.constant 0 : index
    %137 = vector.load %arg8[%c7, %c0_50] : memref<19x384xf32, #tpu.memory_space<vmem>>, vector<1x128xf32>
    %138 = vector.broadcast %137 : vector<1x128xf32> to vector<16x128xf32>
    %139 = arith.addf %136, %138 : vector<16x128xf32>
    %140 = arith.addf %139, %112 : vector<16x128xf32>
    %c8 = arith.constant 8 : index
    %c0_51 = arith.constant 0 : index
    %141 = vector.load %arg8[%c8, %c0_51] : memref<19x384xf32, #tpu.memory_space<vmem>>, vector<1x128xf32>
    %c9 = arith.constant 9 : index
    %c0_52 = arith.constant 0 : index
    %142 = vector.load %arg8[%c9, %c0_52] : memref<19x384xf32, #tpu.memory_space<vmem>>, vector<1x128xf32>
    %cst_53 = arith.constant dense<0.000000e+00> : vector<16xf32>
    %143 = vector.multi_reduction <add>, %140, %cst_53 [1] : vector<16x128xf32> to vector<16xf32>
    %144 = vector.shape_cast %143 : vector<16xf32> to vector<16x1xf32>
    %cst_54 = arith.constant 1.280000e+02 : f32
    %145 = vector.broadcast %cst_54 : f32 to vector<16x1xf32>
    %146 = arith.divf %144, %145 : vector<16x1xf32>
    %147 = arith.mulf %140, %140 : vector<16x128xf32>
    %cst_55 = arith.constant dense<0.000000e+00> : vector<16xf32>
    %148 = vector.multi_reduction <add>, %147, %cst_55 [1] : vector<16x128xf32> to vector<16xf32>
    %149 = vector.shape_cast %148 : vector<16xf32> to vector<16x1xf32>
    %cst_56 = arith.constant 1.280000e+02 : f32
    %150 = vector.broadcast %cst_56 : f32 to vector<16x1xf32>
    %151 = arith.divf %149, %150 : vector<16x1xf32>
    %152 = arith.mulf %146, %146 : vector<16x1xf32>
    %153 = arith.subf %151, %152 : vector<16x1xf32>
    %154 = vector.broadcast %146 : vector<16x1xf32> to vector<16x128xf32>
    %155 = arith.subf %140, %154 : vector<16x128xf32>
    %cst_57 = arith.constant 9.99999996E-13 : f32
    %156 = vector.broadcast %cst_57 : f32 to vector<16x1xf32>
    %157 = arith.addf %153, %156 : vector<16x1xf32>
    %158 = math.rsqrt %157 : vector<16x1xf32>
    %159 = vector.broadcast %158 : vector<16x1xf32> to vector<16x128xf32>
    %160 = arith.mulf %155, %159 : vector<16x128xf32>
    %161 = vector.broadcast %141 : vector<1x128xf32> to vector<16x128xf32>
    %162 = arith.mulf %160, %161 : vector<16x128xf32>
    %163 = vector.broadcast %142 : vector<1x128xf32> to vector<16x128xf32>
    %164 = arith.addf %162, %163 : vector<16x128xf32>
    %165 = arith.truncf %164 : vector<16x128xf32> to vector<16x128xbf16>
    %c1_58 = arith.constant 1 : index
    %c0_59 = arith.constant 0 : index
    %c0_60 = arith.constant 0 : index
    %166 = vector.load %arg3[%c1_58, %c0_59, %c0_60] : memref<2x128x384xbf16, #tpu.memory_space<vmem>>, vector<1x128x384xbf16>
    %167 = vector.shape_cast %166 : vector<1x128x384xbf16> to vector<128x384xbf16>
    %cst_61 = arith.constant dense<0.000000e+00> : vector<16x384xf32>
    %168 = tpu.matmul %165, %167, %cst_61 {dimension_numbers = #tpu.dot_dimension_numbers<[1], [0], [0], [1], [0, 0, 1, 1], [], []>} : vector<16x128xbf16>, vector<128x384xbf16>, vector<16x384xf32> -> vector<16x384xf32>
    %c10 = arith.constant 10 : index
    %c0_62 = arith.constant 0 : index
    %169 = vector.load %arg8[%c10, %c0_62] : memref<19x384xf32, #tpu.memory_space<vmem>>, vector<1x384xf32>
    %170 = vector.broadcast %169 : vector<1x384xf32> to vector<16x384xf32>
    %171 = arith.addf %168, %170 : vector<16x384xf32>
    %172 = vector.extract_strided_slice %171 {offsets = [0, 0], sizes = [16, 128], strides = [1, 1]} : vector<16x384xf32> to vector<16x128xf32>
    %173 = vector.extract_strided_slice %171 {offsets = [0, 128], sizes = [16, 128], strides = [1, 1]} : vector<16x384xf32> to vector<16x128xf32>
    %174 = vector.extract_strided_slice %171 {offsets = [0, 256], sizes = [16, 128], strides = [1, 1]} : vector<16x384xf32> to vector<16x128xf32>
    %175 = vector.extract_strided_slice %172 {offsets = [0, 0], sizes = [16, 64], strides = [1, 1]} : vector<16x128xf32> to vector<16x64xf32>
    %176 = arith.truncf %175 : vector<16x64xf32> to vector<16x64xbf16>
    %177 = vector.extract_strided_slice %173 {offsets = [0, 0], sizes = [16, 64], strides = [1, 1]} : vector<16x128xf32> to vector<16x64xf32>
    %178 = arith.truncf %177 : vector<16x64xf32> to vector<16x64xbf16>
    %cst_63 = arith.constant dense<0.000000e+00> : vector<16x16xf32>
    %179 = tpu.matmul %176, %178, %cst_63 {dimension_numbers = #tpu.dot_dimension_numbers<[1], [1], [0], [0], [0, 0, 1, 0], [], []>} : vector<16x64xbf16>, vector<16x64xbf16>, vector<16x16xf32> -> vector<16x16xf32>
    %180 = vector.broadcast %27 : vector<1x16xf32> to vector<16x16xf32>
    %181 = arith.addf %179, %180 : vector<16x16xf32>
    %cst_64 = arith.constant dense<0xFF800000> : vector<16xf32>
    %182 = vector.multi_reduction <maximumf>, %181, %cst_64 [1] : vector<16x16xf32> to vector<16xf32>
    %183 = vector.shape_cast %182 : vector<16xf32> to vector<16x1xf32>
    %184 = vector.broadcast %183 : vector<16x1xf32> to vector<16x16xf32>
    %185 = arith.subf %181, %184 : vector<16x16xf32>
    %186 = math.exp %185 : vector<16x16xf32>
    %cst_65 = arith.constant dense<0.000000e+00> : vector<16xf32>
    %187 = vector.multi_reduction <add>, %186, %cst_65 [1] : vector<16x16xf32> to vector<16xf32>
    %188 = vector.shape_cast %187 : vector<16xf32> to vector<16x1xf32>
    %189 = tpu.reciprocal %188 {approx = true} : vector<16x1xf32> -> vector<16x1xf32>
    %190 = vector.broadcast %189 : vector<16x1xf32> to vector<16x16xf32>
    %191 = arith.mulf %186, %190 : vector<16x16xf32>
    %192 = arith.truncf %191 : vector<16x16xf32> to vector<16x16xbf16>
    %193 = vector.extract_strided_slice %174 {offsets = [0, 0], sizes = [16, 64], strides = [1, 1]} : vector<16x128xf32> to vector<16x64xf32>
    %194 = arith.truncf %193 : vector<16x64xf32> to vector<16x64xbf16>
    %cst_66 = arith.constant dense<0.000000e+00> : vector<16x64xf32>
    %195 = tpu.matmul %192, %194, %cst_66 {dimension_numbers = #tpu.dot_dimension_numbers<[1], [0], [0], [1], [0, 0, 1, 1], [], []>} : vector<16x16xbf16>, vector<16x64xbf16>, vector<16x64xf32> -> vector<16x64xf32>
    %196 = vector.extract_strided_slice %172 {offsets = [0, 64], sizes = [16, 64], strides = [1, 1]} : vector<16x128xf32> to vector<16x64xf32>
    %197 = arith.truncf %196 : vector<16x64xf32> to vector<16x64xbf16>
    %198 = vector.extract_strided_slice %173 {offsets = [0, 64], sizes = [16, 64], strides = [1, 1]} : vector<16x128xf32> to vector<16x64xf32>
    %199 = arith.truncf %198 : vector<16x64xf32> to vector<16x64xbf16>
    %cst_67 = arith.constant dense<0.000000e+00> : vector<16x16xf32>
    %200 = tpu.matmul %197, %199, %cst_67 {dimension_numbers = #tpu.dot_dimension_numbers<[1], [1], [0], [0], [0, 0, 1, 0], [], []>} : vector<16x64xbf16>, vector<16x64xbf16>, vector<16x16xf32> -> vector<16x16xf32>
    %201 = vector.broadcast %27 : vector<1x16xf32> to vector<16x16xf32>
    %202 = arith.addf %200, %201 : vector<16x16xf32>
    %cst_68 = arith.constant dense<0xFF800000> : vector<16xf32>
    %203 = vector.multi_reduction <maximumf>, %202, %cst_68 [1] : vector<16x16xf32> to vector<16xf32>
    %204 = vector.shape_cast %203 : vector<16xf32> to vector<16x1xf32>
    %205 = vector.broadcast %204 : vector<16x1xf32> to vector<16x16xf32>
    %206 = arith.subf %202, %205 : vector<16x16xf32>
    %207 = math.exp %206 : vector<16x16xf32>
    %cst_69 = arith.constant dense<0.000000e+00> : vector<16xf32>
    %208 = vector.multi_reduction <add>, %207, %cst_69 [1] : vector<16x16xf32> to vector<16xf32>
    %209 = vector.shape_cast %208 : vector<16xf32> to vector<16x1xf32>
    %210 = tpu.reciprocal %209 {approx = true} : vector<16x1xf32> -> vector<16x1xf32>
    %211 = vector.broadcast %210 : vector<16x1xf32> to vector<16x16xf32>
    %212 = arith.mulf %207, %211 : vector<16x16xf32>
    %213 = arith.truncf %212 : vector<16x16xf32> to vector<16x16xbf16>
    %214 = vector.extract_strided_slice %174 {offsets = [0, 64], sizes = [16, 64], strides = [1, 1]} : vector<16x128xf32> to vector<16x64xf32>
    %215 = arith.truncf %214 : vector<16x64xf32> to vector<16x64xbf16>
    %cst_70 = arith.constant dense<0.000000e+00> : vector<16x64xf32>
    %216 = tpu.matmul %213, %215, %cst_70 {dimension_numbers = #tpu.dot_dimension_numbers<[1], [0], [0], [1], [0, 0, 1, 1], [], []>} : vector<16x16xbf16>, vector<16x64xbf16>, vector<16x64xf32> -> vector<16x64xf32>
    %217 = tpu.concatenate %195, %216 in 1 : vector<16x64xf32>, vector<16x64xf32> -> vector<16x128xf32>
    %218 = arith.truncf %217 : vector<16x128xf32> to vector<16x128xbf16>
    %c1_71 = arith.constant 1 : index
    %c0_72 = arith.constant 0 : index
    %c0_73 = arith.constant 0 : index
    %219 = vector.load %arg4[%c1_71, %c0_72, %c0_73] : memref<2x128x128xbf16, #tpu.memory_space<vmem>>, vector<1x128x128xbf16>
    %220 = vector.shape_cast %219 : vector<1x128x128xbf16> to vector<128x128xbf16>
    %cst_74 = arith.constant dense<0.000000e+00> : vector<16x128xf32>
    %221 = tpu.matmul %218, %220, %cst_74 {dimension_numbers = #tpu.dot_dimension_numbers<[1], [0], [0], [1], [0, 0, 1, 1], [], []>} : vector<16x128xbf16>, vector<128x128xbf16>, vector<16x128xf32> -> vector<16x128xf32>
    %c11 = arith.constant 11 : index
    %c0_75 = arith.constant 0 : index
    %222 = vector.load %arg8[%c11, %c0_75] : memref<19x384xf32, #tpu.memory_space<vmem>>, vector<1x128xf32>
    %223 = vector.broadcast %222 : vector<1x128xf32> to vector<16x128xf32>
    %224 = arith.addf %221, %223 : vector<16x128xf32>
    %225 = arith.addf %224, %164 : vector<16x128xf32>
    %c12 = arith.constant 12 : index
    %c0_76 = arith.constant 0 : index
    %226 = vector.load %arg8[%c12, %c0_76] : memref<19x384xf32, #tpu.memory_space<vmem>>, vector<1x128xf32>
    %c13 = arith.constant 13 : index
    %c0_77 = arith.constant 0 : index
    %227 = vector.load %arg8[%c13, %c0_77] : memref<19x384xf32, #tpu.memory_space<vmem>>, vector<1x128xf32>
    %cst_78 = arith.constant dense<0.000000e+00> : vector<16xf32>
    %228 = vector.multi_reduction <add>, %225, %cst_78 [1] : vector<16x128xf32> to vector<16xf32>
    %229 = vector.shape_cast %228 : vector<16xf32> to vector<16x1xf32>
    %cst_79 = arith.constant 1.280000e+02 : f32
    %230 = vector.broadcast %cst_79 : f32 to vector<16x1xf32>
    %231 = arith.divf %229, %230 : vector<16x1xf32>
    %232 = arith.mulf %225, %225 : vector<16x128xf32>
    %cst_80 = arith.constant dense<0.000000e+00> : vector<16xf32>
    %233 = vector.multi_reduction <add>, %232, %cst_80 [1] : vector<16x128xf32> to vector<16xf32>
    %234 = vector.shape_cast %233 : vector<16xf32> to vector<16x1xf32>
    %cst_81 = arith.constant 1.280000e+02 : f32
    %235 = vector.broadcast %cst_81 : f32 to vector<16x1xf32>
    %236 = arith.divf %234, %235 : vector<16x1xf32>
    %237 = arith.mulf %231, %231 : vector<16x1xf32>
    %238 = arith.subf %236, %237 : vector<16x1xf32>
    %239 = vector.broadcast %231 : vector<16x1xf32> to vector<16x128xf32>
    %240 = arith.subf %225, %239 : vector<16x128xf32>
    %cst_82 = arith.constant 9.99999996E-13 : f32
    %241 = vector.broadcast %cst_82 : f32 to vector<16x1xf32>
    %242 = arith.addf %238, %241 : vector<16x1xf32>
    %243 = math.rsqrt %242 : vector<16x1xf32>
    %244 = vector.broadcast %243 : vector<16x1xf32> to vector<16x128xf32>
    %245 = arith.mulf %240, %244 : vector<16x128xf32>
    %246 = vector.broadcast %226 : vector<1x128xf32> to vector<16x128xf32>
    %247 = arith.mulf %245, %246 : vector<16x128xf32>
    %248 = vector.broadcast %227 : vector<1x128xf32> to vector<16x128xf32>
    %249 = arith.addf %247, %248 : vector<16x128xf32>
    %250 = arith.truncf %249 : vector<16x128xf32> to vector<16x128xbf16>
    %c1_83 = arith.constant 1 : index
    %c0_84 = arith.constant 0 : index
    %c0_85 = arith.constant 0 : index
    %251 = vector.load %arg5[%c1_83, %c0_84, %c0_85] : memref<2x128x256xbf16, #tpu.memory_space<vmem>>, vector<1x128x256xbf16>
    %252 = vector.shape_cast %251 : vector<1x128x256xbf16> to vector<128x256xbf16>
    %cst_86 = arith.constant dense<0.000000e+00> : vector<16x256xf32>
    %253 = tpu.matmul %250, %252, %cst_86 {dimension_numbers = #tpu.dot_dimension_numbers<[1], [0], [0], [1], [0, 0, 1, 1], [], []>} : vector<16x128xbf16>, vector<128x256xbf16>, vector<16x256xf32> -> vector<16x256xf32>
    %c14 = arith.constant 14 : index
    %c0_87 = arith.constant 0 : index
    %254 = vector.load %arg8[%c14, %c0_87] : memref<19x384xf32, #tpu.memory_space<vmem>>, vector<1x256xf32>
    %255 = vector.broadcast %254 : vector<1x256xf32> to vector<16x256xf32>
    %256 = arith.addf %253, %255 : vector<16x256xf32>
    %cst_88 = arith.constant 5.000000e-01 : f32
    %257 = vector.broadcast %cst_88 : f32 to vector<16x256xf32>
    %258 = arith.mulf %257, %256 : vector<16x256xf32>
    %cst_89 = arith.constant 4.471500e-02 : f32
    %259 = vector.broadcast %cst_89 : f32 to vector<16x256xf32>
    %260 = arith.mulf %259, %256 : vector<16x256xf32>
    %261 = arith.mulf %260, %256 : vector<16x256xf32>
    %262 = arith.mulf %261, %256 : vector<16x256xf32>
    %263 = arith.addf %256, %262 : vector<16x256xf32>
    %cst_90 = arith.constant 0.797884583 : f32
    %264 = vector.broadcast %cst_90 : f32 to vector<16x256xf32>
    %265 = arith.mulf %264, %263 : vector<16x256xf32>
    %266 = math.tanh %265 : vector<16x256xf32>
    %cst_91 = arith.constant 1.000000e+00 : f32
    %267 = vector.broadcast %cst_91 : f32 to vector<16x256xf32>
    %268 = arith.addf %267, %266 : vector<16x256xf32>
    %269 = arith.mulf %258, %268 : vector<16x256xf32>
    %270 = arith.truncf %269 : vector<16x256xf32> to vector<16x256xbf16>
    %c1_92 = arith.constant 1 : index
    %c0_93 = arith.constant 0 : index
    %c0_94 = arith.constant 0 : index
    %271 = vector.load %arg6[%c1_92, %c0_93, %c0_94] : memref<2x256x128xbf16, #tpu.memory_space<vmem>>, vector<1x256x128xbf16>
    %272 = vector.shape_cast %271 : vector<1x256x128xbf16> to vector<256x128xbf16>
    %cst_95 = arith.constant dense<0.000000e+00> : vector<16x128xf32>
    %273 = tpu.matmul %270, %272, %cst_95 {dimension_numbers = #tpu.dot_dimension_numbers<[1], [0], [0], [1], [0, 0, 1, 1], [], []>} : vector<16x256xbf16>, vector<256x128xbf16>, vector<16x128xf32> -> vector<16x128xf32>
    %c15 = arith.constant 15 : index
    %c0_96 = arith.constant 0 : index
    %274 = vector.load %arg8[%c15, %c0_96] : memref<19x384xf32, #tpu.memory_space<vmem>>, vector<1x128xf32>
    %275 = vector.broadcast %274 : vector<1x128xf32> to vector<16x128xf32>
    %276 = arith.addf %273, %275 : vector<16x128xf32>
    %277 = arith.addf %276, %249 : vector<16x128xf32>
    %c16 = arith.constant 16 : index
    %c0_97 = arith.constant 0 : index
    %278 = vector.load %arg8[%c16, %c0_97] : memref<19x384xf32, #tpu.memory_space<vmem>>, vector<1x128xf32>
    %c17 = arith.constant 17 : index
    %c0_98 = arith.constant 0 : index
    %279 = vector.load %arg8[%c17, %c0_98] : memref<19x384xf32, #tpu.memory_space<vmem>>, vector<1x128xf32>
    %cst_99 = arith.constant dense<0.000000e+00> : vector<16xf32>
    %280 = vector.multi_reduction <add>, %277, %cst_99 [1] : vector<16x128xf32> to vector<16xf32>
    %281 = vector.shape_cast %280 : vector<16xf32> to vector<16x1xf32>
    %cst_100 = arith.constant 1.280000e+02 : f32
    %282 = vector.broadcast %cst_100 : f32 to vector<16x1xf32>
    %283 = arith.divf %281, %282 : vector<16x1xf32>
    %284 = arith.mulf %277, %277 : vector<16x128xf32>
    %cst_101 = arith.constant dense<0.000000e+00> : vector<16xf32>
    %285 = vector.multi_reduction <add>, %284, %cst_101 [1] : vector<16x128xf32> to vector<16xf32>
    %286 = vector.shape_cast %285 : vector<16xf32> to vector<16x1xf32>
    %cst_102 = arith.constant 1.280000e+02 : f32
    %287 = vector.broadcast %cst_102 : f32 to vector<16x1xf32>
    %288 = arith.divf %286, %287 : vector<16x1xf32>
    %289 = arith.mulf %283, %283 : vector<16x1xf32>
    %290 = arith.subf %288, %289 : vector<16x1xf32>
    %291 = vector.broadcast %283 : vector<16x1xf32> to vector<16x128xf32>
    %292 = arith.subf %277, %291 : vector<16x128xf32>
    %cst_103 = arith.constant 9.99999996E-13 : f32
    %293 = vector.broadcast %cst_103 : f32 to vector<16x1xf32>
    %294 = arith.addf %290, %293 : vector<16x1xf32>
    %295 = math.rsqrt %294 : vector<16x1xf32>
    %296 = vector.broadcast %295 : vector<16x1xf32> to vector<16x128xf32>
    %297 = arith.mulf %292, %296 : vector<16x128xf32>
    %298 = vector.broadcast %278 : vector<1x128xf32> to vector<16x128xf32>
    %299 = arith.mulf %297, %298 : vector<16x128xf32>
    %300 = vector.broadcast %279 : vector<1x128xf32> to vector<16x128xf32>
    %301 = arith.addf %299, %300 : vector<16x128xf32>
    %302 = arith.truncf %301 : vector<16x128xf32> to vector<16x128xbf16>
    %c0_104 = arith.constant 0 : index
    %c0_105 = arith.constant 0 : index
    %303 = vector.load %arg7[%c0_104, %c0_105] : memref<128x128xbf16, #tpu.memory_space<vmem>>, vector<128x128xbf16>
    %cst_106 = arith.constant dense<0.000000e+00> : vector<16x128xf32>
    %304 = tpu.matmul %302, %303, %cst_106 {dimension_numbers = #tpu.dot_dimension_numbers<[1], [0], [0], [1], [0, 0, 1, 1], [], []>} : vector<16x128xbf16>, vector<128x128xbf16>, vector<16x128xf32> -> vector<16x128xf32>
    %c18 = arith.constant 18 : index
    %c0_107 = arith.constant 0 : index
    %305 = vector.load %arg8[%c18, %c0_107] : memref<19x384xf32, #tpu.memory_space<vmem>>, vector<1x128xf32>
    %306 = vector.broadcast %305 : vector<1x128xf32> to vector<16x128xf32>
    %307 = arith.addf %304, %306 : vector<16x128xf32>
    %c0_108 = arith.constant 0 : index
    %c0_109 = arith.constant 0 : index
    %c0_110 = arith.constant 0 : index
    %308 = vector.load %arg9[%c0_108, %c0_109, %c0_110] : memref<1x16x128xf32, #tpu.memory_space<vmem>>, vector<1x16x128xf32>
    %309 = vector.shape_cast %308 : vector<1x16x128xf32> to vector<16x128xf32>
    %310 = vector.shape_cast %307 : vector<16x128xf32> to vector<1x16x128xf32>
    tpu.vector_store %arg9[%c0_108, %c0_109, %c0_110], %310 {strides = array<i32>} : memref<1x16x128xf32, #tpu.memory_space<vmem>>, vector<1x16x128xf32>,
    return
  }
  func.func @transform_0(%arg0: i32) -> (i32, i32, i32) {
    %c0_i32 = arith.constant 0 : i32
    %c0_i32_0 = arith.constant 0 : i32
    %c0_i32_1 = arith.constant 0 : i32
    return %arg0, %c0_i32, %c0_i32_0 : i32, i32, i32
  }
  func.func @transform_1(%arg0: i32) -> (i32, i32, i32) {
    %c0_i32 = arith.constant 0 : i32
    %c0_i32_0 = arith.constant 0 : i32
    %c0_i32_1 = arith.constant 0 : i32
    return %arg0, %c0_i32, %c0_i32_0 : i32, i32, i32
  }
  func.func @transform_2(%arg0: i32) -> (i32, i32, i32) {
    %c0_i32 = arith.constant 0 : i32
    %c0_i32_0 = arith.constant 0 : i32
    %c0_i32_1 = arith.constant 0 : i32
    %c0_i32_2 = arith.constant 0 : i32
    return %c0_i32, %c0_i32_0, %c0_i32_1 : i32, i32, i32
  }
  func.func @transform_3(%arg0: i32) -> (i32, i32, i32) {
    %c0_i32 = arith.constant 0 : i32
    %c0_i32_0 = arith.constant 0 : i32
    %c0_i32_1 = arith.constant 0 : i32
    %c0_i32_2 = arith.constant 0 : i32
    return %c0_i32, %c0_i32_0, %c0_i32_1 : i32, i32, i32
  }
  func.func @transform_4(%arg0: i32) -> (i32, i32, i32) {
    %c0_i32 = arith.constant 0 : i32
    %c0_i32_0 = arith.constant 0 : i32
    %c0_i32_1 = arith.constant 0 : i32
    %c0_i32_2 = arith.constant 0 : i32
    return %c0_i32, %c0_i32_0, %c0_i32_1 : i32, i32, i32
  }
  func.func @transform_5(%arg0: i32) -> (i32, i32, i32) {
    %c0_i32 = arith.constant 0 : i32
    %c0_i32_0 = arith.constant 0 : i32
    %c0_i32_1 = arith.constant 0 : i32
    %c0_i32_2 = arith.constant 0 : i32
    return %c0_i32, %c0_i32_0, %c0_i32_1 : i32, i32, i32
  }
  func.func @transform_6(%arg0: i32) -> (i32, i32) {
    %c0_i32 = arith.constant 0 : i32
    %c0_i32_0 = arith.constant 0 : i32
    %c0_i32_1 = arith.constant 0 : i32
    return %c0_i32, %c0_i32_0 : i32, i32
  }
  func.func @transform_7(%arg0: i32) -> (i32, i32) {
    %c0_i32 = arith.constant 0 : i32
    %c0_i32_0 = arith.constant 0 : i32
    %c0_i32_1 = arith.constant 0 : i32
    return %c0_i32, %c0_i32_0 : i32, i32
  }
  func.func @transform_8(%arg0: i32) -> (i32, i32, i32) {
    %c0_i32 = arith.constant 0 : i32
    %c0_i32_0 = arith.constant 0 : i32
    %c0_i32_1 = arith.constant 0 : i32
    return %arg0, %c0_i32, %c0_i32_0 : i32, i32, i32
  }
}

</mosaic_0001>

<bundles_post_ra>
// kernel: qa_model_forward.1
= control target key start
LH: loop header
LB: loop body
LE: loop exit
PB: predicated region body
PF: predicated region fallthrough
CT: control target
= control target key end

     0   :  { %13 = vsyncpa [#allocation3], 0  ;;  %s4218_s0 = inlined_call_operand.vmem [shape: f32[2,16,128], index: 0, kind: input, shape index: {}]   ;;  %s4219_s1 = inlined_call_operand.vmem [shape: f32[2,1,16], index: 1, kind: input, shape index: {}]   ;;  %s4220_s2 = inlined_call_operand.vmem [shape: bf16[2,128,384], index: 2, kind: input, shape index: {}]   ;;  %s4221_s3 = inlined_call_operand.vmem [shape: bf16[2,128,128], index: 3, kind: input, shape index: {}]   ;;  %s4222_s4 = inlined_call_operand.vmem [shape: bf16[2,128,256], index: 4, kind: input, shape index: {}]   ;;  %s4223_s5 = inlined_call_operand.hbm [shape: bf16[2,256,128], index: 5, kind: input, shape index: {}]   ;;  %s4224_s6 = inlined_call_operand.vmem [shape: bf16[128,128], index: 6, kind: input, shape index: {}]   ;;  %s4225_s7 = inlined_call_operand.hbm [shape: f32[19,384], index: 7, kind: input, shape index: {}]   ;;  %s4226_s8 = inlined_call_operand.vmem [shape: f32[2,16,128], index: 8, kind: output, shape index: {}]  }
   0x1   :  { %14 = vsyncpa [#allocation5], 0  ;;  %s3583_s27 = smov 0  }
   0x2 LB: > { %s3528_s28 = smov [#allocation2]   ;;  %s3589_s30 = sadd.s32 4294967295, %s3526_s27   ;;  %s3526_s27 = sphi %s3583_s27, %s20_s27  }
   0x3   : > { %s250_s29 = sshll.u32 %s3528_s28, 4  ;;  %p2696_p0 = scmp.ge.s32.totalorder %s3526_s27, 1  ;;  %s251_s29 = int_to_ptr.vmem [resolvable:$true] %s250_s29 }
   0x4   : > { %p229_p1 = scmp.lt.s32.totalorder %s3526_s27, 3  ;;  %p4227_p3 = scmp.eq.s32.totalorder %s3589_s30, 0 }
   0x5   : > { %s3529_s10 = smov [#allocation4]   ;;  %s3456_s15 = scalar_lea.hbm %s4223_s5, 4096 }
   0x6   : > { %p3593_p2 = pnand %p2696_p0, %p229_p1  ;;  %s266_s11 = sshll.u32 %s3529_s10, 4  ;;  %s3606_s11 = int_to_ptr.vmem [resolvable:$true] %s266_s11 }
   0x7   : > { %p3457_p6 = scmp.ne.s32.totalorder %s4223_s5, %s3456_s15  ;;  %p3463_p10 = scmp.lt.u32.totalorder %s3456_s15, %s4223_s5 }
   0x8   : > { %s4229_s9 = scalar_select %p3593_p2, 1, 0 }
   0x9   : > { %p3181_p4 = pneg %p3593_p2 }
   0xb   : > { %p3602_p5 = pnand %p4227_p3, %p3181_p4 }
   0xd   : > { %p3458_p7 = pneg %p3602_p5 }
   0xf   : > { %p3459_p8 = pnand %p3458_p7, %p3457_p6 }
  0x11   : > { %p3460_p9 = pneg %p3459_p8 }
  0x13   : > { %p3465_p11 = pnand %p3463_p10, %p3460_p9 }
  0x15   : > { %3468 = shalt.err (!%p3465_p11)
}
  0x16   : > { %s3469_s20 = scalar_lea.vmem %s251_s29, 4096  ;;  %p3477_p1 = scmp.lt.s32.totalorder %s251_s29, %s251_s29 }
  0x17   : > { %p3470_p12 = scmp.ne.s32.totalorder %s251_s29, %s3469_s20  ;;  %p3478_p4 = scmp.lt.s32.totalorder %s3469_s20, %s3469_s20 }
  0x19   : > { %p3472_p13 = pnand %p3470_p12, %p3458_p7  ;;  %p3479_p3 = por %p3478_p4, %p3477_p1 }
  0x1b   : > { %p3473_p0 = pneg %p3472_p13 }
  0x1d   : > { %p3480_p2 = pnand %p3479_p3, %p3473_p0 }
  0x1f   : > { %3483 = shalt.err (!%p3480_p2)
}
  0x20   : > { %s3530_s21 = smov 64   ;;  %s3531_s22 = smov 4  }
  0x21   : > { %3184 = dma.hbm_to_vmem [thread:$0]  (!%p3602_p5), %s4223_s5, 4096, %s251_s29, [#allocation3], %s3530_s21, %s3530_s21, %s3531_s22  }
  0x22   : > { %s3484_s28 = scalar_lea.hbm %s4225_s7, 1152 }
  0x23   : > { %p3485_p6 = scmp.ne.s32.totalorder %s4225_s7, %s3484_s28  ;;  %p3491_p8 = scmp.lt.u32.totalorder %s3484_s28, %s4225_s7 }
  0x25   : > { %p3487_p2 = pnand %p3485_p6, %p3458_p7 }
  0x27   : > { %p3488_p3 = pneg %p3487_p2 }
  0x29   : > { %p3493_p9 = pnand %p3491_p8, %p3488_p3 }
  0x2b   : > { %3496 = shalt.err (!%p3493_p9)
}
  0x2c   : > { %s3497_s29 = scalar_lea.vmem %s3606_s11, 1152  ;;  %p3505_p13 = scmp.lt.s32.totalorder %s3606_s11, %s3606_s11 }
  0x2d   : > { %p3498_p10 = scmp.ne.s32.totalorder %s3606_s11, %s3497_s29  ;;  %p3506_p0 = scmp.lt.s32.totalorder %s3497_s29, %s3497_s29 }
  0x2f   : > { %p3500_p11 = pnand %p3498_p10, %p3458_p7  ;;  %p3507_p1 = por %p3506_p0, %p3505_p13 }
  0x31   : > { %p3501_p12 = pneg %p3500_p11 }
  0x33   : > { %p3508_p4 = pnand %p3507_p1, %p3501_p12 }
  0x35   : > { %3511 = shalt.err (!%p3508_p4)
}
  0x36   : > { %s3532_s16 = smov 384   ;;  %s3533_s17 = smov 24  }
  0x37   : > { %3187 = dma.hbm_to_vmem [thread:$0]  (!%p3602_p5), %s4225_s7, 1152, %s3606_s11, [#allocation5], %s3532_s16, %s3532_s16, %s3533_s17  }
  0x38   : > { %p4231_p6 = scmp.ne.s32.totalorder %s4229_s9, 0 }
  0x39   : > { %p4232_p7 = scmp.eq.s32.totalorder (!%p4231_p6), %s3589_s30, 0 }
  0x3a   : > { %296 = sbr.rel (%p4231_p6) target bundleno = 5363 (0x14f3), region = 52 }
  0x41   : > { %3517 = dma.done.wait (%p4232_p7), [#allocation3], 4096   ;;  %p4233_p2 = pmov %p4232_p7 }
  0x43   : > { %3519 = vsyncadd (%p4233_p2), [#allocation3], 4294963200  ;;  %p4234_p3 = pmov %p4233_p2 }
  0x44   : > { %p4235_p8 = pmov %p4233_p2 }
  0x45   : > { %3521 = dma.done.wait (%p4234_p3), [#allocation5], 1152  }
  0x46   : > { %3523 = vsyncadd (%p4235_p8), [#allocation5], 4294966144  ;;  %p337_p9 = scmp.lt.s32.totalorder %s3589_s30, 1  ;;  %v3534_v0 = vmov 0.0   ;;  %v3220_v4 = vld [vmem:[%s4220_s2 + $0x4] ss:$12 sps:$4 sm:$0xff]   ;;  %v423_v57 = vlaneseq }
  0x47   : > { %3025 = vmatprep.subr.bf16.mxu1 %v3534_v0  ;;  %566 = vmatprep.subr.bf16.mxu0 %v3220_v4  ;;  %v3222_v6 = vld [vmem:[%s4220_s2] ss:$12 sps:$4 sm:$0xff]   ;;  %v3223_v7 = vld [vmem:[%s4220_s2 + $0x8] ss:$12 sps:$4 sm:$0xff]   ;;  %v3226_v9 = vld [vmem:[%s4220_s2 + $0x18] ss:$12 sps:$4 sm:$0xff]  }
  0x48   : > { %s4237_s30 = smov (!%p337_p9, %s3589_s30), 1  ;;  %567 = vmatpush1.bf16.msra.mxu0 %v3222_v6  ;;  %3026 = vmatpush3.bf16.msra.mxu1 %v3223_v7  ;;  %v3224_v8 = vld [vmem:[%s4220_s2 + $0x1c] ss:$12 sps:$4 sm:$0xff]   ;;  %v3227_v10 = vld [vmem:[%s4220_s2 + $0x20] ss:$12 sps:$4 sm:$0xff]   ;;  %v3535_v26 = vmov 0  }
  0x49   : > { %s2918_s9 = sshll.u32 %s4237_s30, 4  ;;  %3027 = vmatprep.subr.bf16.mxu1 %v3534_v0  ;;  %568 = vmatprep.subr.bf16.mxu0 %v3224_v8  ;;  %v3228_v11 = vld [vmem:[%s4220_s2 + $0x34] ss:$12 sps:$4 sm:$0xff]   ;;  %v3230_v12 = vld [vmem:[%s4220_s2 + $0x30] ss:$12 sps:$4 sm:$0xff]   ;;  %vm3536_vm0 = vmmov 0   ;;  %s344_s17 = scalar_lea.vmem %s4219_s1, %s4237_s30 }
  0x4a   : > { %s341_s20 = scalar_lea.vmem %s4218_s0, %s2918_s9  ;;  %v3231_v13 = vld [vmem:[%s4220_s2 + $0x38] ss:$12 sps:$4 sm:$0xff]   ;;  %v3234_v15 = vld [vmem:[%s4220_s2 + $0x48] ss:$12 sps:$4 sm:$0xff]   ;;  %v3235_v16 = vld [vmem:[%s4220_s2 + $0x50] ss:$12 sps:$4 sm:$0xff]   ;;  %598 = vmatprep.mubr.bf16.mxu0 %v3535_v26  ;;  %3041 = vmatprep.mubr.msk.bf16.mxu1 %vm3536_vm0, %v3534_v0  ;;  %s349_s29 = scalar_lea.vmem %s4226_s8, %s2918_s9 }
  0x4b   : > { %v3676_v1 = vld [vmem:[%s341_s20] sm:$0xff]  ;;  %v3678_v2 = vld [vmem:[%s341_s20 + $0x8] sm:$0xff]  ;;  %v3246_v24 = vld [vmem:[%s4220_s2 + $0x90] ss:$12 sps:$4 sm:$0xff]   ;;  %v3782_v58 = vshrl.u32 %v423_v57, 7  ;;  %vm658_vm1 = vcmask 523264  }
  0x4c   : > { %355 = vadd.xlane.f32.xlu0 %v3676_v1  ;;  %v362_v3 = vmul.f32 %v3676_v1, %v3676_v1  ;;  %v363_v5 = vmul.f32 %v3678_v2, %v3678_v2  ;;  %569 = vmatpush1.bf16.msra.mxu0 %v3226_v9  ;;  %v3232_v14 = vld [vmem:[%s4220_s2 + $0x4c] ss:$12 sps:$4 sm:$0xff]   ;;  %v3236_v17 = vld [vmem:[%s4220_s2 + $0x64] ss:$12 sps:$4 sm:$0xff]   ;;  %v3239_v19 = vld [vmem:[%s4220_s2 + $0x68] ss:$12 sps:$4 sm:$0xff]  }
  0x4d   : > { %3028 = vmatpush3.bf16.msra.mxu1 %v3227_v10  ;;  %570 = vmatprep.subr.bf16.mxu0 %v3228_v11  ;;  %v3238_v18 = vld [vmem:[%s4220_s2 + $0x60] ss:$12 sps:$4 sm:$0xff]   ;;  %v3240_v20 = vld [vmem:[%s4220_s2 + $0x7c] ss:$12 sps:$4 sm:$0xff]   ;;  %v3242_v21 = vld [vmem:[%s4220_s2 + $0x78] ss:$12 sps:$4 sm:$0xff]  }
  0x4e   : > { %364 = vadd.xlane.f32.xlu1 %v362_v3  ;;  %3029 = vmatprep.subr.bf16.mxu1 %v3534_v0  ;;  %v3243_v22 = vld [vmem:[%s4220_s2 + $0x80] ss:$12 sps:$4 sm:$0xff]   ;;  %v3247_v25 = vld [vmem:[%s4220_s2 + $0x98] ss:$12 sps:$4 sm:$0xff]   ;;  %v3250_v28 = vld [vmem:[%s4220_s2 + $0xa8] ss:$12 sps:$4 sm:$0xff]  }
  0x4f   : > { %v3244_v23 = vld [vmem:[%s4220_s2 + $0x94] ss:$12 sps:$4 sm:$0xff]   ;;  %v3248_v27 = vld [vmem:[%s4220_s2 + $0xac] ss:$12 sps:$4 sm:$0xff]   ;;  %v3251_v29 = vld [vmem:[%s4220_s2 + $0xb0] ss:$12 sps:$4 sm:$0xff]  }
  0x50   : > { %357 = vadd.xlane.f32.xlu0 %v3678_v2  ;;  %571 = vmatpush1.bf16.msra.mxu0 %v3230_v12  ;;  %v353_v47 = vld [vmem:[#allocation4] ss:$0 sm:$0xff]  ;;  %v354_v52 = vld [vmem:[#allocation4 + $0x1] ss:$0 sm:$0xff]  ;;  %v3785_v59 = vsub.s32 0, %v3782_v58  ;;  %v433_v60 = vsub.s32 2, %v3782_v58 }
  0x51   : > { %3030 = vmatpush3.bf16.msra.mxu1 %v3231_v13  ;;  %572 = vmatprep.subr.bf16.mxu0 %v3232_v14  ;;  %v421_v61 = vld [vmem:[#allocation4 + $0x2] ss:$8 sm:$0x7]  ;;  %v3789_v62 = vsub.s32 1, %v3782_v58  ;;  %s3537_s15 = smov 64   ;;  %vm706_vm2 = vcmask 130048  }
  0x52   : > { %366 = vadd.xlane.f32.xlu1 %v363_v5  ;;  %3031 = vmatprep.subr.bf16.mxu1 %v3534_v0  ;;  %v426_v63 = vrot.slane %v421_v61, %v3785_v59 }
  0x53   : > { %v430_v4 = vrot.slane %v421_v61, %v3789_v62 }
  0x54   : > { %573 = vmatpush1.bf16.msra.mxu0 %v3234_v15 }
  0x55   : > { %3032 = vmatpush3.bf16.msra.mxu1 %v3235_v16  ;;  %574 = vmatprep.subr.bf16.mxu0 %v3236_v17 }
  0x56   : > { %3033 = vmatprep.subr.bf16.mxu1 %v3534_v0 }
  0x58   : > { %575 = vmatpush1.bf16.msra.mxu0 %v3238_v18 }
  0x59   : > { %3034 = vmatpush3.bf16.msra.mxu1 %v3239_v19  ;;  %576 = vmatprep.subr.bf16.mxu0 %v3240_v20 }
  0x5a   : > { %3035 = vmatprep.subr.bf16.mxu1 %v3534_v0 }
  0x5c   : > { %577 = vmatpush1.bf16.msra.mxu0 %v3242_v21 }
  0x5d   : > { %3036 = vmatpush3.bf16.msra.mxu1 %v3243_v22  ;;  %578 = vmatprep.subr.bf16.mxu0 %v3244_v23 }
  0x5e   : > { %3037 = vmatprep.subr.bf16.mxu1 %v3534_v0 }
  0x60   : > { %579 = vmatpush1.bf16.msra.mxu0 %v3246_v24  ;;  %v3815_v24 = vld [vmem:[%s344_s17] ss:$0 sm:$0xff] }
  0x61   : > { %3038 = vmatpush3.bf16.msra.mxu1 %v3247_v25  ;;  %580 = vmatprep.subr.bf16.mxu0 %v3248_v27 }
  0x62   : > { %3039 = vmatprep.subr.bf16.mxu1 %v3534_v0 }
  0x64   : > { %581 = vmatpush1.bf16.msra.mxu0 %v3250_v28 }
  0x65   : > { %3040 = vmatpush3.bf16.msra.mxu1 %v3251_v29  ;;  %3045 = vmatprep.subr.bf16.mxu0 %v3534_v0 }
  0x66   : > { %3051 = vmatprep.subr.bf16.mxu1 %v3534_v0 }
  0xd9   : > { %v356_v30 = vpop.xlane.xlu0 %355 }
  0xda   : > { %v360_v31 = vmul.f32 0.0078125, %v356_v30 }
  0xdb   : > { %v365_v32 = vpop.xlane.xlu1 %364 }
  0xdc   : > { %v370_v33 = vmul.f32 %v360_v31, %v360_v31  ;;  %v368_v34 = vmul.f32 0.0078125, %v365_v32  ;;  %v374_v44 = vsub.f32 %v3676_v1, %v360_v31  ;;  %v434_v1 = vrot.slane %v421_v61, %v433_v60 }
  0xdd   : > { %v358_v35 = vpop.xlane.xlu0 %357 }
  0xde   : > { %v372_v36 = vsub.f32 %v368_v34, %v370_v33  ;;  %v361_v37 = vmul.f32 0.0078125, %v358_v35 }
  0xdf   : > { %v367_v38 = vpop.xlane.xlu1 %366 }
  0xe0   : > { %v376_v39 = vadd.f32 1e-12, %v372_v36  ;;  %v371_v40 = vmul.f32 %v361_v37, %v361_v37  ;;  %v369_v41 = vmul.f32 0.0078125, %v367_v38  ;;  %v375_v48 = vsub.f32 %v3678_v2, %v361_v37 }
  0xe2   : > { %3388 = vrsqrt.f32 %v376_v39  ;;  %v373_v42 = vsub.f32 %v369_v41, %v371_v40 }
  0xe4   : > { %v377_v43 = vadd.f32 1e-12, %v373_v42 }
  0xe6   : > { %3390 = vrsqrt.f32 %v377_v43 }
  0xec   : > { %v3389_v45 = vpop.eup %3388 }
  0xed   : > { %v380_v46 = vmul.f32 %v3389_v45, %v374_v44 }
  0xef   : > { %v382_v51 = vmul.f32 %v380_v46, %v353_v47 }
  0xf0   : > { %v3391_v49 = vpop.eup %3390 }
  0xf1   : > { %v381_v50 = vmul.f32 %v3391_v49, %v375_v48  ;;  %v3772_v54 = vadd.f32 %v382_v51, %v354_v52 }
  0xf3   : > { %v383_v53 = vmul.f32 %v381_v50, %v353_v47 }
  0xf5   : > { %v3774_v55 = vadd.f32 %v383_v53, %v354_v52 }
  0xf7   : > { %v387_v56 = vpack.c.bf16 %v3774_v55, %v3772_v54 }
  0xf9   : > { %599 = vmatmul.mubr.bf16.vlgmr.msra.gmra.mrb[0].mxu0 %v387_v56  ;;  %3042 = vmatmul.mubr.bf16.vlgmr.msra.gmra.mrb[0].mxu1 %v387_v56 }
  0xfa   : > { %3047 = vmatprep.mubr.msk.bf16.mxu0 %vm3536_vm0, %v3534_v0  ;;  %3053 = vmatprep.mubr.msk.bf16.mxu1 %vm3536_vm0, %v3534_v0 }
 0x1cc   : > { %v600_v2 = vpop.f32.mrb[0].mxu0  ;;  %v643_v3 = vpop.f32.mrb[0].mxu1 }
 0x1cd   : > { %v602_v5 = vpop.f32.mrb[1].mxu0  ;;  %v3043_v6 = vpop.f32.mrb[1].mxu1  ;;  %v601_v9 = vadd.f32 %v600_v2, %v426_v63  ;;  %v644_v10 = vadd.f32 %v643_v3, %v434_v1 }
 0x1ce   : > { %v604_v7 = vpop.f32.mrb[2].mxu0  ;;  %v646_v8 = vpop.f32.mrb[2].mxu1  ;;  %v603_v15 = vadd.f32 %v602_v5, %v430_v4 }
 0x1cf   : > { %v605_v11 = vadd.f32 %v604_v7, %v426_v63  ;;  %v647_v12 = vadd.f32 %v646_v8, %v434_v1  ;;  %v606_v13 = vpop.f32.mrb[3].mxu0  ;;  %v3044_v14 = vpop.f32.mrb[3].mxu1 }
 0x1d0   : > { %v607_v16 = vadd.f32 %v606_v13, %v430_v4 }
 0x1d1   : > { %v650_v17 = vpack.c.bf16 %v605_v11, %v601_v9  ;;  %v3795_v18 = vpack.c.bf16 %v647_v12, %v644_v10 }
 0x1d2   : > { %v651_v19 = vpack.c.bf16 %v607_v16, %v603_v15 }
 0x1d3   : > { %3052 = vmatpush3.bf16.msra.mxu1 %v3795_v18  ;;  %776 = vrot.lane.b32.xlu1 %v650_v17, %s3537_s15 }
 0x1d4   : > { %779 = vrot.lane.b32.xlu0 %v651_v19, %s3537_s15  ;;  %v663_v20 = vsel %vm658_vm1, %v651_v19, 0  ;;  %3063 = vmatprep.subr.bf16.mxu1 %v3534_v0 }
 0x1d5   : > { %3046 = vmatpush3.bf16.xpose.msra.mxu0 %v663_v20  ;;  %v3252_v20 = vld [vmem:[%s4221_s3] sm:$0xff]  }
 0x1d6   : > { %3057 = vmatprep.subr.bf16.mxu0 %v3534_v0 }
 0x1dc   : > { %3048 = vmatmul.mubr.msk.bf16.vlgmr.msra.gmra.mrb[4].mxu0 %vm658_vm1, %v650_v17 }
 0x1dd   : > { %3059 = vmatprep.mubr.msk.bf16.mxu0 %vm3536_vm0, %v3534_v0 }
 0x245   : > { %v777_v23 = vpop.permute.xlu1 %776 }
 0x246   : > { %v780_v21 = vpop.permute.xlu0 %779 }
 0x247   : > { %v785_v22 = vsel %vm658_vm1, %v780_v21, 0  ;;  %v3253_v21 = vld [vmem:[%s4221_s3 + $0x8] sm:$0xff]  }
 0x248   : > { %3058 = vmatpush3.bf16.xpose.msra.mxu0 %v785_v22  ;;  %v3254_v22 = vld [vmem:[%s4221_s3 + $0x10] sm:$0xff]  }
 0x249   : > { %3069 = vmatprep.subr.bf16.mxu0 %v3534_v0 }
 0x24f   : > { %3060 = vmatmul.mubr.msk.bf16.vlgmr.msra.gmra.mrb[8].mxu0 %vm658_vm1, %v777_v23 }
 0x250   : > { %3085 = vmatprep.mubr.msk.bf16.mxu0 %vm3536_vm0, %v3534_v0  ;;  %3070 = vmatpush3.bf16.msra.mxu0 %v3252_v20 }
 0x251   : > { %3071 = vmatprep.subr.bf16.mxu0 %v3534_v0 }
 0x254   : > { %3072 = vmatpush3.bf16.msra.mxu0 %v3253_v21 }
 0x255   : > { %3073 = vmatprep.subr.bf16.mxu0 %v3534_v0 }
 0x258   : > { %3074 = vmatpush3.bf16.msra.mxu0 %v3254_v22 }
 0x259   : > { %3075 = vmatprep.subr.bf16.mxu0 %v3534_v0 }
 0x2af   : > { %v699_v25 = vpop.f32.mrb[4].mxu0 }
 0x2b0   : > { %v700_v27 = vadd.f32 %v3815_v24, %v699_v25  ;;  %v3049_v28 = vpop.f32.mrb[5].mxu0 }
 0x2b1   : > { %v702_v29 = vpop.f32.mrb[6].mxu0  ;;  %v3255_v28 = vld [vmem:[%s4221_s3 + $0x18] sm:$0xff]  }
 0x2b2   : > { %v703_v30 = vadd.f32 %v3815_v24, %v702_v29  ;;  %v3050_v31 = vpop.f32.mrb[7].mxu0  ;;  %v707_v32 = vsel %vm706_vm2, %v700_v27, -inf  ;;  %3076 = vmatpush3.bf16.msra.mxu0 %v3255_v28 }
 0x2b3   : > { %708 = vmax.xlane.f32.xlu1 %v707_v32  ;;  %3077 = vmatprep.subr.bf16.mxu0 %v3534_v0  ;;  %v3257_v31 = vld [vmem:[%s4221_s3 + $0x28] sm:$0xff]   ;;  %v3258_v32 = vld [vmem:[%s4221_s3 + $0x30] sm:$0xff]  }
 0x2b4   : > { %v710_v33 = vsel %vm706_vm2, %v703_v30, -inf }
 0x2b5   : > { %711 = vmax.xlane.f32.xlu0 %v710_v33  ;;  %v3259_v33 = vld [vmem:[%s4221_s3 + $0x38] sm:$0xff]  }
 0x322   : > { %v821_v34 = vpop.f32.mrb[8].mxu0 }
 0x323   : > { %v822_v35 = vadd.f32 %v3815_v24, %v821_v34  ;;  %v3061_v36 = vpop.f32.mrb[9].mxu0 }
 0x324   : > { %v824_v37 = vpop.f32.mrb[10].mxu0 }
 0x325   : > { %v825_v38 = vadd.f32 %v3815_v24, %v824_v37  ;;  %v3062_v39 = vpop.f32.mrb[11].mxu0  ;;  %v828_v40 = vsel %vm706_vm2, %v822_v35, -inf }
 0x326   : > { %829 = vmax.xlane.f32.xlu0 %v828_v40 }
 0x327   : > { %v831_v41 = vsel %vm706_vm2, %v825_v38, -inf }
 0x328   : > { %832 = vmax.xlane.f32.xlu1 %v831_v41 }
 0x340   : > { %v709_v42 = vpop.xlane.xlu1 %708 }
 0x341   : > { %v713_v43 = vsub.f32 %v700_v27, %v709_v42 }
 0x342   : > { %v712_v44 = vpop.xlane.xlu0 %711 }
 0x343   : > { %v715_v45 = vmul.f32 1.442695, %v713_v43  ;;  %v714_v46 = vsub.f32 %v703_v30, %v712_v44  ;;  %v3256_v30 = vld [vmem:[%s4221_s3 + $0x20] sm:$0xff]  }
 0x344   : > { %3078 = vmatpush3.bf16.msra.mxu0 %v3256_v30 }
 0x345   : > { %3392 = vpow2.f32 %v715_v45  ;;  %v717_v47 = vmul.f32 1.442695, %v714_v46  ;;  %3079 = vmatprep.subr.bf16.mxu0 %v3534_v0  ;;  %v3260_v45 = vld [vmem:[%s4222_s4] ss:$8 sps:$4 sm:$0xff]   ;;  %v3262_v46 = vld [vmem:[%s4222_s4 + $0x4] ss:$8 sps:$4 sm:$0xff]  }
 0x347   : > { %3394 = vpow2.f32 %v717_v47  ;;  %v926_v47 = vld [vmem:[#allocation4 + $0x3] ss:$0 sm:$0xff] }
 0x348   : > { %3080 = vmatpush3.bf16.msra.mxu0 %v3257_v31  ;;  %v1018_v31 = vld [vmem:[#allocation4 + $0x4] ss:$0 sm:$0xff] }
 0x349   : > { %3081 = vmatprep.subr.bf16.mxu0 %v3534_v0 }
 0x34c   : > { %3082 = vmatpush3.bf16.msra.mxu0 %v3258_v32 }
 0x34d   : > { %3083 = vmatprep.subr.bf16.mxu0 %v3534_v0 }
 0x34f   : > { %v3393_v48 = vpop.eup %3392 }
 0x350   : > { %v719_v49 = vsel %vm706_vm2, %v3393_v48, 0.0  ;;  %3084 = vmatpush3.bf16.msra.mxu0 %v3259_v33 }
 0x351   : > { %v3395_v50 = vpop.eup %3394  ;;  %720 = vadd.xlane.f32.xlu0 %v719_v49 }
 0x352   : > { %v722_v51 = vsel %vm706_vm2, %v3395_v50, 0.0 }
 0x353   : > { %723 = vadd.xlane.f32.xlu1 %v722_v51 }
 0x3b3   : > { %v830_v52 = vpop.xlane.xlu0 %829 }
 0x3b4   : > { %v834_v53 = vsub.f32 %v822_v35, %v830_v52 }
 0x3b5   : > { %v833_v56 = vpop.xlane.xlu1 %832 }
 0x3b6   : > { %v836_v57 = vmul.f32 1.442695, %v834_v53  ;;  %v835_v61 = vsub.f32 %v825_v38, %v833_v56 }
 0x3b8   : > { %3396 = vpow2.f32 %v836_v57  ;;  %v838_v63 = vmul.f32 1.442695, %v835_v61 }
 0x3ba   : > { %3398 = vpow2.f32 %v838_v63 }
 0x3c2   : > { %v3397_v1 = vpop.eup %3396 }
 0x3c3   : > { %v840_v2 = vsel %vm706_vm2, %v3397_v1, 0.0 }
 0x3c4   : > { %v3399_v3 = vpop.eup %3398  ;;  %841 = vadd.xlane.f32.xlu0 %v840_v2  ;;  %v3263_v2 = vld [vmem:[%s4222_s4 + $0x10] ss:$8 sps:$4 sm:$0xff]  }
 0x3c5   : > { %v843_v4 = vsel %vm706_vm2, %v3399_v3, 0.0 }
 0x3c6   : > { %844 = vadd.xlane.f32.xlu1 %v843_v4  ;;  %v3269_v4 = vld [vmem:[%s4222_s4 + $0x30] ss:$8 sps:$4 sm:$0xff]  }
 0x3da   : > { %852 = vrot.lane.b32.xlu0 %v3795_v18, %s3537_s15 }
 0x3de   : > { %v721_v5 = vpop.xlane.xlu0 %720 }
 0x3df   : > { %3400 = vrcp.f32 %v721_v5  ;;  %v3272_v5 = vld [vmem:[%s4222_s4 + $0x40] ss:$8 sps:$4 sm:$0xff]  }
 0x3e0   : > { %v724_v6 = vpop.xlane.xlu1 %723 }
 0x3e1   : > { %3402 = vrcp.f32 %v724_v6  ;;  %v3274_v6 = vld [vmem:[%s4222_s4 + $0x44] ss:$8 sps:$4 sm:$0xff]  }
 0x3e9   : > { %v3401_v7 = vpop.eup %3400 }
 0x3ea   : > { %v727_v9 = vmul.f32 %v3401_v7, %v3393_v48  ;;  %v3277_v7 = vld [vmem:[%s4222_s4 + $0x54] ss:$8 sps:$4 sm:$0xff]  }
 0x3eb   : > { %v3403_v8 = vpop.eup %3402 }
 0x3ec   : > { %v728_v10 = vmul.f32 %v3403_v8, %v3395_v50  ;;  %v3275_v8 = vld [vmem:[%s4222_s4 + $0x50] ss:$8 sps:$4 sm:$0xff]  }
 0x3ee   : > { %v729_v11 = vpack.c.bf16 %v728_v10, %v727_v9  ;;  %v3280_v9 = vld [vmem:[%s4222_s4 + $0x64] ss:$8 sps:$4 sm:$0xff]   ;;  %v3278_v10 = vld [vmem:[%s4222_s4 + $0x60] ss:$8 sps:$4 sm:$0xff]  }
 0x3f0   : > { %3054 = vmatmul.mubr.msk.bf16.vlgmr.msra.gmra.mrb[4].mxu1 %vm706_vm2, %v729_v11  ;;  %v3283_v11 = vld [vmem:[%s4222_s4 + $0x74] ss:$8 sps:$4 sm:$0xff]  }
 0x3f1   : > { %3065 = vmatprep.mubr.msk.bf16.mxu1 %vm3536_vm0, %v3534_v0 }
 0x451   : > { %v842_v12 = vpop.xlane.xlu0 %841 }
 0x452   : > { %3404 = vrcp.f32 %v842_v12  ;;  %v3281_v12 = vld [vmem:[%s4222_s4 + $0x70] ss:$8 sps:$4 sm:$0xff]  }
 0x453   : > { %v845_v13 = vpop.xlane.xlu1 %844 }
 0x454   : > { %3406 = vrcp.f32 %v845_v13 }
 0x455   : > { %v853_v14 = vpop.permute.xlu0 %852 }
 0x456   : > { %3064 = vmatpush3.bf16.msra.mxu1 %v853_v14 }
 0x457   : > { %1160 = vmatprep.subr.bf16.mxu1 %v3262_v46  ;;  %v3288_v46 = vld [vmem:[#allocation2 + $0x50] sm:$0xff]  }
 0x45c   : > { %v3405_v15 = vpop.eup %3404 }
 0x45d   : > { %v848_v17 = vmul.f32 %v3405_v15, %v3397_v1  ;;  %v3265_v1 = vld [vmem:[%s4222_s4 + $0x14] ss:$8 sps:$4 sm:$0xff]  }
 0x45e   : > { %v3407_v16 = vpop.eup %3406 }
 0x45f   : > { %v849_v18 = vmul.f32 %v3407_v16, %v3399_v3  ;;  %v3271_v3 = vld [vmem:[%s4222_s4 + $0x34] ss:$8 sps:$4 sm:$0xff]  }
 0x461   : > { %v850_v19 = vpack.c.bf16 %v849_v18, %v848_v17 }
 0x463   : > { %3066 = vmatmul.mubr.msk.bf16.vlgmr.msra.gmra.mrb[8].mxu1 %vm706_vm2, %v850_v19 }
 0x464   : > { %1192 = vmatprep.mubr.bf16.mxu1 %v3535_v26  ;;  %1161 = vmatpush1.bf16.msra.mxu1 %v3260_v45  ;;  %v3287_v45 = vld [vmem:[#allocation2 + $0x8] sm:$0xff]  }
 0x465   : > { %1162 = vmatprep.subr.bf16.mxu1 %v3265_v1  ;;  %v1068_v1 = vld [vmem:[#allocation4 + $0x6] ss:$8 sm:$0x3] }
 0x468   : > { %1163 = vmatpush1.bf16.msra.mxu1 %v3263_v2  ;;  %v1073_v2 = vrot.slane %v1068_v1, %v3785_v59 }
 0x4c3   : > { %v768_v23 = vpop.f32.mrb[4].mxu1 }
 0x4c4   : > { %v3055_v25 = vpop.f32.mrb[5].mxu1 }
 0x4c5   : > { %v771_v27 = vpop.f32.mrb[6].mxu1 }
 0x4c6   : > { %v3056_v29 = vpop.f32.mrb[7].mxu1 }
 0x536   : > { %v892_v34 = vpop.f32.mrb[8].mxu1 }
 0x537   : > { %v3067_v35 = vpop.f32.mrb[9].mxu1 }
 0x538   : > { %v895_v36 = vpop.f32.mrb[10].mxu1 }
 0x539   : > { %v3210_v37 = vpack.i.bf16 %v895_v36, %v892_v34  ;;  %v3068_v38 = vpop.f32.mrb[11].mxu1 }
 0x53b   : > { %3211 = vrot.lane.b32.xlu1 %v3210_v37, %s3537_s15  ;;  %v1019_v37 = vld [vmem:[#allocation4 + $0x5] ss:$0 sm:$0xff] }
 0x5ad   : > { %v3212_v39 = vpop.permute.xlu1 %3211 }
 0x5ae   : > { %v3214_v40 = vunpack.i.h.bf16 %v3212_v39  ;;  %v3213_v41 = vunpack.i.l.bf16 %v3212_v39 }
 0x5b0   : > { %v908_v42 = vsel %vm658_vm1, %v771_v27, %v3214_v40  ;;  %v907_v43 = vsel %vm658_vm1, %v768_v23, %v3213_v41 }
 0x5b1   : > { %v909_v44 = vpack.c.bf16 %v908_v42, %v907_v43  ;;  %v3284_v42 = vld [vmem:[#allocation2 + $0x40] sm:$0xff]  }
 0x5b2   : > { %v3285_v43 = vld [vmem:[#allocation2] sm:$0xff]   ;;  %2946 = vmatprep.subr.bf16.mxu0 %v3284_v42 }
 0x5b3   : > { %3086 = vmatmul.mubr.bf16.vlgmr.msra.gmra.mrb[12].mxu0 %v909_v44  ;;  %v3286_v44 = vld [vmem:[#allocation2 + $0x48] sm:$0xff]  }
 0x5b4   : > { %2947 = vmatpush3.bf16.msra.mxu0 %v3285_v43 }
 0x5b5   : > { %2948 = vmatprep.subr.bf16.mxu0 %v3286_v44 }
 0x5b8   : > { %2949 = vmatpush3.bf16.msra.mxu0 %v3287_v45 }
 0x5b9   : > { %2950 = vmatprep.subr.bf16.mxu0 %v3288_v46 }
 0x686   : > { %v1009_v48 = vpop.f32.mrb[12].mxu0 }
 0x687   : > { %v1010_v49 = vadd.f32 %v1009_v48, %v926_v47  ;;  %v3087_v50 = vpop.f32.mrb[13].mxu0  ;;  %v3290_v48 = vld [vmem:[#allocation2 + $0x58] sm:$0xff]  }
 0x688   : > { %v1012_v51 = vpop.f32.mrb[14].mxu0  ;;  %v3292_v50 = vld [vmem:[#allocation2 + $0x60] sm:$0xff]  }
 0x689   : > { %v1016_v52 = vadd.f32 %v1010_v49, %v3772_v54  ;;  %v1013_v53 = vadd.f32 %v1012_v51, %v926_v47  ;;  %v3088_v56 = vpop.f32.mrb[15].mxu0  ;;  %v3268_v54 = vld [vmem:[%s4222_s4 + $0x24] ss:$8 sps:$4 sm:$0xff]   ;;  %v3289_v47 = vld [vmem:[#allocation2 + $0x10] sm:$0xff]   ;;  %v3291_v49 = vld [vmem:[#allocation2 + $0x18] sm:$0xff]  }
 0x68a   : > { %1164 = vmatprep.subr.bf16.mxu1 %v3268_v54  ;;  %2951 = vmatpush3.bf16.msra.mxu0 %v3289_v47  ;;  %v3293_v51 = vld [vmem:[#allocation2 + $0x20] sm:$0xff]   ;;  %v3296_v56 = vld [vmem:[#allocation2 + $0x70] sm:$0xff]   ;;  %v1077_v54 = vrot.slane %v1068_v1, %v3789_v62 }
 0x68b   : > { %v1017_v57 = vadd.f32 %v1013_v53, %v3774_v55  ;;  %1020 = vadd.xlane.f32.xlu1 %v1016_v52  ;;  %v1026_v63 = vmul.f32 %v1016_v52, %v1016_v52  ;;  %v3266_v55 = vld [vmem:[%s4222_s4 + $0x20] ss:$8 sps:$4 sm:$0xff]   ;;  %2952 = vmatprep.subr.bf16.mxu0 %v3290_v48 }
 0x68c   : > { %1165 = vmatpush1.bf16.msra.mxu1 %v3266_v55  ;;  %v3295_v53 = vld [vmem:[#allocation2 + $0x28] sm:$0xff]  }
 0x68d   : > { %1022 = vadd.xlane.f32.xlu0 %v1017_v57  ;;  %v1027_v61 = vmul.f32 %v1017_v57, %v1017_v57  ;;  %1166 = vmatprep.subr.bf16.mxu1 %v3271_v3 }
 0x68e   : > { %2953 = vmatpush3.bf16.msra.mxu0 %v3291_v49 }
 0x68f   : > { %1030 = vadd.xlane.f32.xlu1 %v1027_v61  ;;  %2954 = vmatprep.subr.bf16.mxu0 %v3292_v50  ;;  %v3298_v61 = vld [vmem:[#allocation2 + $0x78] sm:$0xff]  }
 0x690   : > { %1167 = vmatpush1.bf16.msra.mxu1 %v3269_v4 }
 0x691   : > { %1028 = vadd.xlane.f32.xlu0 %v1026_v63  ;;  %1168 = vmatprep.subr.bf16.mxu1 %v3274_v6  ;;  %v3299_v63 = vld [vmem:[#allocation2 + $0x38] sm:$0xff]  }
 0x692   : > { %2955 = vmatpush3.bf16.msra.mxu0 %v3293_v51 }
 0x694   : > { %1169 = vmatpush1.bf16.msra.mxu1 %v3272_v5 }
 0x695   : > { %1170 = vmatprep.subr.bf16.mxu1 %v3277_v7 }
 0x698   : > { %1171 = vmatpush1.bf16.msra.mxu1 %v3275_v8 }
 0x699   : > { %1172 = vmatprep.subr.bf16.mxu1 %v3280_v9 }
 0x69c   : > { %1173 = vmatpush1.bf16.msra.mxu1 %v3278_v10 }
 0x69d   : > { %1174 = vmatprep.subr.bf16.mxu1 %v3283_v11 }
 0x6a0   : > { %1175 = vmatpush1.bf16.msra.mxu1 %v3281_v12 }
 0x718   : > { %v1021_v13 = vpop.xlane.xlu1 %1020 }
 0x719   : > { %v1024_v15 = vmul.f32 0.0078125, %v1021_v13 }
 0x71a   : > { %v1023_v14 = vpop.xlane.xlu0 %1022 }
 0x71b   : > { %v1025_v16 = vmul.f32 0.0078125, %v1023_v14  ;;  %v1034_v21 = vmul.f32 %v1024_v15, %v1024_v15  ;;  %v1038_v32 = vsub.f32 %v1016_v52, %v1024_v15  ;;  %v3294_v52 = vld [vmem:[#allocation2 + $0x68] sm:$0xff]  }
 0x71c   : > { %v1031_v17 = vpop.xlane.xlu1 %1030  ;;  %2956 = vmatprep.subr.bf16.mxu0 %v3294_v52  ;;  %v3300_v52 = vld [vmem:[%s4220_s2 + $0xc0] ss:$12 sps:$4 sm:$0xff]  }
 0x71d   : > { %v1035_v18 = vmul.f32 %v1025_v16, %v1025_v16  ;;  %v1033_v19 = vmul.f32 0.0078125, %v1031_v17  ;;  %v1039_v29 = vsub.f32 %v1017_v57, %v1025_v16  ;;  %2957 = vmatpush3.bf16.msra.mxu0 %v3295_v53  ;;  %v3297_v57 = vld [vmem:[#allocation2 + $0x30] sm:$0xff]  }
 0x71e   : > { %v1029_v20 = vpop.xlane.xlu0 %1028  ;;  %2958 = vmatprep.subr.bf16.mxu0 %v3296_v56  ;;  %v3302_v53 = vld [vmem:[%s4220_s2 + $0xc4] ss:$12 sps:$4 sm:$0xff]  }
 0x71f   : > { %v1037_v22 = vsub.f32 %v1033_v19, %v1035_v18  ;;  %v1032_v23 = vmul.f32 0.0078125, %v1029_v20  ;;  %1625 = vmatprep.subr.bf16.mxu1 %v3302_v53 }
 0x721   : > { %v1041_v25 = vadd.f32 1e-12, %v1037_v22  ;;  %v1036_v27 = vsub.f32 %v1032_v23, %v1034_v21  ;;  %2959 = vmatpush3.bf16.msra.mxu0 %v3297_v57  ;;  %v1273_v57 = vld [vmem:[#allocation4 + $0x7] ss:$0 sm:$0xff] }
 0x722   : > { %2960 = vmatprep.subr.bf16.mxu0 %v3298_v61 }
 0x723   : > { %3408 = vrsqrt.f32 %v1041_v25  ;;  %v1040_v28 = vadd.f32 1e-12, %v1036_v27 }
 0x725   : > { %3410 = vrsqrt.f32 %v1040_v28  ;;  %2961 = vmatpush3.bf16.msra.mxu0 %v3299_v63 }
 0x726   : > { %3089 = vmatprep.subr.bf16.mxu0 %v3534_v0 }
 0x72d   : > { %v3409_v30 = vpop.eup %3408 }
 0x72e   : > { %v1045_v33 = vmul.f32 %v3409_v30, %v1039_v29 }
 0x72f   : > { %v3411_v34 = vpop.eup %3410 }
 0x730   : > { %v1044_v35 = vmul.f32 %v3411_v34, %v1038_v32  ;;  %v1047_v36 = vmul.f32 %v1045_v33, %v1018_v31 }
 0x732   : > { %v1046_v38 = vmul.f32 %v1044_v35, %v1018_v31  ;;  %v3922_v40 = vadd.f32 %v1047_v36, %v1019_v37 }
 0x734   : > { %v3920_v39 = vadd.f32 %v1046_v38, %v1019_v37 }
 0x736   : > { %v1050_v41 = vpack.c.bf16 %v3922_v40, %v3920_v39 }
 0x738   : > { %1193 = vmatmul.mubr.bf16.vlgmr.msra.gmra.mrb[12].mxu1 %v1050_v41 }
 0x739   : > { %1657 = vmatprep.mubr.bf16.mxu1 %v3535_v26  ;;  %1626 = vmatpush1.bf16.msra.mxu1 %v3300_v52 }
 0x80b   : > { %v1194_v55 = vpop.f32.mrb[12].mxu1 }
 0x80c   : > { %v1195_v3 = vadd.f32 %v1194_v55, %v1073_v2  ;;  %v1196_v4 = vpop.f32.mrb[13].mxu1 }
 0x80d   : > { %v1197_v5 = vadd.f32 %v1196_v4, %v1077_v54  ;;  %v1198_v6 = vpop.f32.mrb[14].mxu1 }
 0x80e   : > { %v1207_v7 = vmul.f32 0.044715, %v1195_v3  ;;  %v1199_v8 = vadd.f32 %v1198_v6, %v1073_v2  ;;  %v1200_v9 = vpop.f32.mrb[15].mxu1  ;;  %v1203_v38 = vmul.f32 0.5, %v1195_v3 }
 0x80f   : > { %v1208_v10 = vmul.f32 0.044715, %v1197_v5  ;;  %v1201_v11 = vadd.f32 %v1200_v9, %v1077_v54  ;;  %v1204_v43 = vmul.f32 0.5, %v1197_v5  ;;  %v3307_v9 = vld [vmem:[%s4220_s2 + $0xe0] ss:$12 sps:$4 sm:$0xff]  }
 0x810   : > { %v1211_v12 = vmul.f32 %v1207_v7, %v1195_v3  ;;  %v1209_v13 = vmul.f32 0.044715, %v1199_v8  ;;  %v1205_v41 = vmul.f32 0.5, %v1199_v8 }
 0x811   : > { %v1212_v14 = vmul.f32 %v1208_v10, %v1197_v5  ;;  %v1210_v15 = vmul.f32 0.044715, %v1201_v11  ;;  %v1206_v44 = vmul.f32 0.5, %v1201_v11  ;;  %v3310_v10 = vld [vmem:[%s4220_s2 + $0xf4] ss:$12 sps:$4 sm:$0xff]  }
 0x812   : > { %v1215_v16 = vmul.f32 %v1211_v12, %v1195_v3  ;;  %v1213_v17 = vmul.f32 %v1209_v13, %v1199_v8  ;;  %v3311_v12 = vld [vmem:[%s4220_s2 + $0xf8] ss:$12 sps:$4 sm:$0xff]  }
 0x813   : > { %v1216_v18 = vmul.f32 %v1212_v14, %v1197_v5  ;;  %v1214_v19 = vmul.f32 %v1210_v15, %v1201_v11  ;;  %v3314_v13 = vld [vmem:[%s4220_s2 + $0x10c] ss:$12 sps:$4 sm:$0xff]   ;;  %v3312_v14 = vld [vmem:[%s4220_s2 + $0x108] ss:$12 sps:$4 sm:$0xff]   ;;  %v3315_v15 = vld [vmem:[%s4220_s2 + $0x110] ss:$12 sps:$4 sm:$0xff]  }
 0x814   : > { %v1219_v20 = vadd.f32 %v1215_v16, %v1195_v3  ;;  %v1217_v21 = vmul.f32 %v1213_v17, %v1199_v8  ;;  %v3316_v16 = vld [vmem:[%s4220_s2 + $0x120] ss:$12 sps:$4 sm:$0xff]   ;;  %v3318_v17 = vld [vmem:[%s4220_s2 + $0x124] ss:$12 sps:$4 sm:$0xff]  }
 0x815   : > { %v1218_v22 = vmul.f32 %v1214_v19, %v1201_v11  ;;  %v1220_v23 = vadd.f32 %v1216_v18, %v1197_v5  ;;  %v3319_v18 = vld [vmem:[%s4220_s2 + $0x128] ss:$12 sps:$4 sm:$0xff]  }
 0x816   : > { %v1223_v25 = vmul.f32 0.7978846, %v1219_v20  ;;  %v1221_v27 = vadd.f32 %v1217_v21, %v1199_v8  ;;  %v3304_v8 = vld [vmem:[%s4220_s2 + $0xd8] ss:$12 sps:$4 sm:$0xff]   ;;  %v3322_v19 = vld [vmem:[%s4220_s2 + $0x13c] ss:$12 sps:$4 sm:$0xff]  }
 0x817   : > { %v1222_v28 = vadd.f32 %v1218_v22, %v1201_v11  ;;  %v1224_v29 = vmul.f32 0.7978846, %v1220_v23  ;;  %v3308_v11 = vld [vmem:[%s4220_s2 + $0xf0] ss:$12 sps:$4 sm:$0xff]   ;;  %v3320_v20 = vld [vmem:[%s4220_s2 + $0x138] ss:$12 sps:$4 sm:$0xff]  }
 0x818   : > { %3412 = vtanh.f32 %v1223_v25  ;;  %v1225_v30 = vmul.f32 0.7978846, %v1221_v27  ;;  %v3323_v21 = vld [vmem:[%s4220_s2 + $0x140] ss:$12 sps:$4 sm:$0xff]   ;;  %v3324_v23 = vld [vmem:[%s4220_s2 + $0x150] ss:$12 sps:$4 sm:$0xff]  }
 0x819   : > { %v1226_v31 = vmul.f32 0.7978846, %v1222_v28  ;;  %3414 = vtanh.f32 %v1224_v29  ;;  %v3326_v22 = vld [vmem:[%s4220_s2 + $0x154] ss:$12 sps:$4 sm:$0xff]   ;;  %v3327_v25 = vld [vmem:[%s4220_s2 + $0x158] ss:$12 sps:$4 sm:$0xff]  }
 0x81a   : > { %3416 = vtanh.f32 %v1225_v30  ;;  %v3330_v27 = vld [vmem:[%s4220_s2 + $0x16c] ss:$12 sps:$4 sm:$0xff]   ;;  %v3328_v28 = vld [vmem:[%s4220_s2 + $0x168] ss:$12 sps:$4 sm:$0xff]   ;;  %v3331_v29 = vld [vmem:[%s4220_s2 + $0x170] ss:$12 sps:$4 sm:$0xff]  }
 0x81b   : > { %3418 = vtanh.f32 %v1226_v31 }
 0x822   : > { %v3413_v32 = vpop.eup %3412 }
 0x823   : > { %v3415_v33 = vpop.eup %3414  ;;  %v1231_v34 = vadd.f32 1.0, %v3413_v32 }
 0x824   : > { %v3417_v35 = vpop.eup %3416  ;;  %v1232_v36 = vadd.f32 1.0, %v3415_v33 }
 0x825   : > { %v3419_v37 = vpop.eup %3418  ;;  %v1233_v42 = vadd.f32 1.0, %v3417_v35  ;;  %v1235_v46 = vmul.f32 %v1231_v34, %v1203_v38 }
 0x826   : > { %v1234_v45 = vadd.f32 1.0, %v3419_v37  ;;  %v1236_v48 = vmul.f32 %v1232_v36, %v1204_v43 }
 0x827   : > { %v1237_v47 = vmul.f32 %v1233_v42, %v1205_v41 }
 0x828   : > { %v1238_v49 = vmul.f32 %v1234_v45, %v1206_v44 }
 0x829   : > { %v1239_v50 = vpack.c.bf16 %v1237_v47, %v1235_v46 }
 0x82a   : > { %v1240_v51 = vpack.c.bf16 %v1238_v49, %v1236_v48  ;;  %v1413_v48 = vld [vmem:[#allocation4 + $0x18] ss:$0 sm:$0xff] }
 0x82c   : > { %1402 = vmatprep.mubr.bf16.mxu0 %v1240_v51 }
 0x82d   : > { %1403 = vmatmul.mubr.bf16.vlgmr.msra.gmra.mrb[16].mxu0 %v1239_v50 }
 0x82e   : > { %3105 = vmatprep.mubr.msk.bf16.mxu0 %vm3536_vm0, %v3534_v0 }
 0x900   : > { %v2962_v56 = vpop.f32.mrb[16].mxu0 }
 0x901   : > { %v2963_v61 = vpop.f32.mrb[17].mxu0 }
 0x902   : > { %v2964_v63 = vadd.f32 %v2963_v61, %v2962_v56  ;;  %v2965_v1 = vpop.f32.mrb[18].mxu0  ;;  %v1414_v56 = vld [vmem:[#allocation4 + $0x19] ss:$0 sm:$0xff] }
 0x903   : > { %v2966_v2 = vpop.f32.mrb[19].mxu0 }
 0x904   : > { %v1405_v54 = vadd.f32 %v2964_v63, %v1273_v57  ;;  %v2967_v55 = vadd.f32 %v2966_v2, %v2965_v1  ;;  %v1480_v2 = vld [vmem:[#allocation4 + $0x1a] ss:$8 sm:$0x7] }
 0x906   : > { %v1408_v3 = vadd.f32 %v2967_v55, %v1273_v57  ;;  %v3939_v4 = vadd.f32 %v1405_v54, %v3920_v39  ;;  %v3303_v39 = vld [vmem:[%s4220_s2 + $0xc8] ss:$12 sps:$4 sm:$0xff]   ;;  %v1485_v54 = vrot.slane %v1480_v2, %v3785_v59  ;;  %v1493_v55 = vrot.slane %v1480_v2, %v433_v60 }
 0x907   : > { %3090 = vmatpush3.bf16.msra.mxu0 %v3303_v39 }
 0x908   : > { %1415 = vadd.xlane.f32.xlu0 %v3939_v4  ;;  %v3943_v5 = vadd.f32 %v1408_v3, %v3922_v40  ;;  %v1421_v6 = vmul.f32 %v3939_v4, %v3939_v4  ;;  %v3306_v40 = vld [vmem:[%s4220_s2 + $0xdc] ss:$12 sps:$4 sm:$0xff]   ;;  %3091 = vmatprep.subr.bf16.mxu0 %v3534_v0 }
 0x909   : > { %1627 = vmatprep.subr.bf16.mxu1 %v3306_v40 }
 0x90a   : > { %1417 = vadd.xlane.f32.xlu1 %v3943_v5  ;;  %v1422_v7 = vmul.f32 %v3943_v5, %v3943_v5  ;;  %1628 = vmatpush1.bf16.msra.mxu1 %v3304_v8 }
 0x90b   : > { %3092 = vmatpush3.bf16.msra.mxu0 %v3307_v9  ;;  %1629 = vmatprep.subr.bf16.mxu1 %v3310_v10 }
 0x90c   : > { %1423 = vadd.xlane.f32.xlu0 %v1421_v6  ;;  %3093 = vmatprep.subr.bf16.mxu0 %v3534_v0 }
 0x90e   : > { %1425 = vadd.xlane.f32.xlu1 %v1422_v7  ;;  %1630 = vmatpush1.bf16.msra.mxu1 %v3308_v11 }
 0x90f   : > { %3094 = vmatpush3.bf16.msra.mxu0 %v3311_v12  ;;  %1631 = vmatprep.subr.bf16.mxu1 %v3314_v13 }
 0x910   : > { %3095 = vmatprep.subr.bf16.mxu0 %v3534_v0 }
 0x912   : > { %1632 = vmatpush1.bf16.msra.mxu1 %v3312_v14 }
 0x913   : > { %3096 = vmatpush3.bf16.msra.mxu0 %v3315_v15  ;;  %1633 = vmatprep.subr.bf16.mxu1 %v3318_v17 }
 0x914   : > { %3097 = vmatprep.subr.bf16.mxu0 %v3534_v0 }
 0x916   : > { %1634 = vmatpush1.bf16.msra.mxu1 %v3316_v16 }
 0x917   : > { %3098 = vmatpush3.bf16.msra.mxu0 %v3319_v18  ;;  %1635 = vmatprep.subr.bf16.mxu1 %v3322_v19 }
 0x918   : > { %3099 = vmatprep.subr.bf16.mxu0 %v3534_v0 }
 0x91a   : > { %1636 = vmatpush1.bf16.msra.mxu1 %v3320_v20 }
 0x91b   : > { %3100 = vmatpush3.bf16.msra.mxu0 %v3323_v21  ;;  %1637 = vmatprep.subr.bf16.mxu1 %v3326_v22 }
 0x91c   : > { %3101 = vmatprep.subr.bf16.mxu0 %v3534_v0 }
 0x91e   : > { %1638 = vmatpush1.bf16.msra.mxu1 %v3324_v23 }
 0x91f   : > { %3102 = vmatpush3.bf16.msra.mxu0 %v3327_v25  ;;  %1639 = vmatprep.subr.bf16.mxu1 %v3330_v27 }
 0x920   : > { %3103 = vmatprep.subr.bf16.mxu0 %v3534_v0 }
 0x922   : > { %1640 = vmatpush1.bf16.msra.mxu1 %v3328_v28 }
 0x923   : > { %3104 = vmatpush3.bf16.msra.mxu0 %v3331_v29  ;;  %3109 = vmatprep.subr.bf16.mxu1 %v3534_v0 }
 0x924   : > { %3133 = vmatprep.subr.bf16.mxu0 %v3534_v0 }
 0x995   : > { %v1416_v30 = vpop.xlane.xlu0 %1415 }
 0x996   : > { %v1419_v31 = vmul.f32 0.0078125, %v1416_v30 }
 0x997   : > { %v1418_v32 = vpop.xlane.xlu1 %1417 }
 0x998   : > { %v1420_v33 = vmul.f32 0.0078125, %v1418_v32  ;;  %v1429_v35 = vmul.f32 %v1419_v31, %v1419_v31  ;;  %v1433_v46 = vsub.f32 %v3939_v4, %v1419_v31 }
 0x999   : > { %v1424_v34 = vpop.xlane.xlu0 %1423 }
 0x99a   : > { %v1427_v36 = vmul.f32 0.0078125, %v1424_v34  ;;  %v1430_v38 = vmul.f32 %v1420_v33, %v1420_v33  ;;  %v1434_v49 = vsub.f32 %v3943_v5, %v1420_v33  ;;  %v1489_v5 = vrot.slane %v1480_v2, %v3789_v62 }
 0x99b   : > { %v1426_v37 = vpop.xlane.xlu1 %1425 }
 0x99c   : > { %v1431_v41 = vsub.f32 %v1427_v36, %v1429_v35  ;;  %v1428_v42 = vmul.f32 0.0078125, %v1426_v37 }
 0x99e   : > { %v1435_v43 = vadd.f32 1e-12, %v1431_v41  ;;  %v1432_v44 = vsub.f32 %v1428_v42, %v1430_v38 }
 0x9a0   : > { %3420 = vrsqrt.f32 %v1435_v43  ;;  %v1436_v45 = vadd.f32 1e-12, %v1432_v44 }
 0x9a2   : > { %3422 = vrsqrt.f32 %v1436_v45 }
 0x9aa   : > { %v3421_v47 = vpop.eup %3420 }
 0x9ab   : > { %v1439_v50 = vmul.f32 %v3421_v47, %v1433_v46 }
 0x9ac   : > { %v3423_v51 = vpop.eup %3422 }
 0x9ad   : > { %v1440_v52 = vmul.f32 %v3423_v51, %v1434_v49  ;;  %v1441_v53 = vmul.f32 %v1439_v50, %v1413_v48 }
 0x9af   : > { %v1442_v57 = vmul.f32 %v1440_v52, %v1413_v48  ;;  %v4027_v61 = vadd.f32 %v1441_v53, %v1414_v56 }
 0x9b1   : > { %v4029_v63 = vadd.f32 %v1442_v57, %v1414_v56 }
 0x9b3   : > { %v1445_v1 = vpack.c.bf16 %v4029_v63, %v4027_v61 }
 0x9b5   : > { %1658 = vmatmul.mubr.bf16.vlgmr.msra.gmra.mrb[16].mxu1 %v1445_v1  ;;  %3106 = vmatmul.mubr.bf16.vlgmr.msra.gmra.mrb[20].mxu0 %v1445_v1 }
 0x9b6   : > { %3111 = vmatprep.mubr.msk.bf16.mxu1 %vm3536_vm0, %v3534_v0  ;;  %3149 = vmatprep.mubr.msk.bf16.mxu0 %vm3536_vm0, %v3534_v0 }
 0xa88   : > { %v1659_v3 = vpop.f32.mrb[16].mxu1  ;;  %v1702_v4 = vpop.f32.mrb[20].mxu0 }
 0xa89   : > { %v1661_v6 = vpop.f32.mrb[17].mxu1  ;;  %v3107_v7 = vpop.f32.mrb[21].mxu0  ;;  %v1660_v8 = vadd.f32 %v1659_v3, %v1485_v54  ;;  %v1703_v9 = vadd.f32 %v1702_v4, %v1493_v55 }
 0xa8a   : > { %v1663_v39 = vpop.f32.mrb[18].mxu1  ;;  %v1705_v40 = vpop.f32.mrb[22].mxu0  ;;  %v1662_v14 = vadd.f32 %v1661_v6, %v1489_v5 }
 0xa8b   : > { %v1664_v10 = vadd.f32 %v1663_v39, %v1485_v54  ;;  %v1706_v11 = vadd.f32 %v1705_v40, %v1493_v55  ;;  %v1665_v12 = vpop.f32.mrb[19].mxu1  ;;  %v3108_v13 = vpop.f32.mrb[23].mxu0 }
 0xa8c   : > { %v1666_v15 = vadd.f32 %v1665_v12, %v1489_v5 }
 0xa8d   : > { %v1709_v16 = vpack.c.bf16 %v1664_v10, %v1660_v8  ;;  %v4041_v17 = vpack.c.bf16 %v1706_v11, %v1703_v9 }
 0xa8e   : > { %v1710_v58 = vpack.c.bf16 %v1666_v15, %v1662_v14 }
 0xa90   : > { %v1715_v60 = vsel %vm658_vm1, %v1710_v58, 0 }
 0xa91   : > { %3110 = vmatpush3.bf16.xpose.msra.mxu1 %v1715_v60 }
 0xa92   : > { %3115 = vmatprep.subr.bf16.mxu1 %v3534_v0 }
 0xa98   : > { %3112 = vmatmul.mubr.msk.bf16.vlgmr.msra.gmra.mrb[20].mxu1 %vm658_vm1, %v1709_v16 }
 0xa99   : > { %3116 = vmatpush3.bf16.msra.mxu1 %v4041_v17  ;;  %3117 = vmatprep.mubr.msk.bf16.mxu1 %vm3536_vm0, %v3534_v0 }
 0xa9a   : > { %3121 = vmatprep.subr.bf16.mxu1 %v3534_v0 }
 0xb6b   : > { %v1751_v18 = vpop.f32.mrb[20].mxu1 }
 0xb6c   : > { %v1752_v19 = vadd.f32 %v3815_v24, %v1751_v18  ;;  %v3113_v20 = vpop.f32.mrb[21].mxu1 }
 0xb6d   : > { %v1754_v21 = vpop.f32.mrb[22].mxu1  ;;  %v3334_v20 = vld [vmem:[%s4221_s3 + $0x50] sm:$0xff]  }
 0xb6e   : > { %v1755_v22 = vadd.f32 %v3815_v24, %v1754_v21  ;;  %v3114_v23 = vpop.f32.mrb[23].mxu1  ;;  %v1758_v25 = vsel %vm706_vm2, %v1752_v19, -inf  ;;  %v3336_v21 = vld [vmem:[%s4221_s3 + $0x60] sm:$0xff]  }
 0xb6f   : > { %1759 = vmax.xlane.f32.xlu0 %v1758_v25  ;;  %v3338_v23 = vld [vmem:[%s4221_s3 + $0x70] sm:$0xff]   ;;  %v3339_v25 = vld [vmem:[%s4221_s3 + $0x78] sm:$0xff]  }
 0xb70   : > { %v1761_v27 = vsel %vm706_vm2, %v1755_v22, -inf }
 0xb71   : > { %1762 = vmax.xlane.f32.xlu1 %v1761_v27 }
 0xbfc   : > { %v1760_v28 = vpop.xlane.xlu0 %1759 }
 0xbfd   : > { %v1764_v29 = vsub.f32 %v1752_v19, %v1760_v28  ;;  %v3332_v19 = vld [vmem:[%s4221_s3 + $0x40] sm:$0xff]  }
 0xbfe   : > { %v1763_v30 = vpop.xlane.xlu1 %1762  ;;  %3134 = vmatpush3.bf16.msra.mxu0 %v3332_v19 }
 0xbff   : > { %v1766_v31 = vmul.f32 1.442695, %v1764_v29  ;;  %v1765_v32 = vsub.f32 %v1755_v22, %v1763_v30  ;;  %3135 = vmatprep.subr.bf16.mxu0 %v3534_v0  ;;  %v3337_v22 = vld [vmem:[%s4221_s3 + $0x68] sm:$0xff]  }
 0xc01   : > { %3424 = vpow2.f32 %v1766_v31  ;;  %v1768_v33 = vmul.f32 1.442695, %v1765_v32 }
 0xc03   : > { %3426 = vpow2.f32 %v1768_v33 }
 0xc0b   : > { %v3425_v34 = vpop.eup %3424 }
 0xc0c   : > { %v1770_v35 = vsel %vm706_vm2, %v3425_v34, 0.0 }
 0xc0d   : > { %v3427_v36 = vpop.eup %3426  ;;  %1771 = vadd.xlane.f32.xlu0 %v1770_v35 }
 0xc0e   : > { %v1773_v37 = vsel %vm706_vm2, %v3427_v36, 0.0 }
 0xc0f   : > { %1774 = vadd.xlane.f32.xlu1 %v1773_v37 }
 0xc20   : > { %1827 = vrot.lane.b32.xlu1 %v1709_v16, %s3537_s15 }
 0xc23   : > { %1830 = vrot.lane.b32.xlu0 %v1710_v58, %s3537_s15 }
 0xc9a   : > { %v1772_v38 = vpop.xlane.xlu0 %1771 }
 0xc9b   : > { %3428 = vrcp.f32 %v1772_v38  ;;  %v3340_v38 = vld [vmem:[%s4222_s4 + $0x80] ss:$8 sps:$4 sm:$0xff]  }
 0xc9c   : > { %v1775_v41 = vpop.xlane.xlu1 %1774 }
 0xc9d   : > { %3430 = vrcp.f32 %v1775_v41  ;;  %v3342_v41 = vld [vmem:[%s4222_s4 + $0x84] ss:$8 sps:$4 sm:$0xff]  }
 0xc9e   : > { %v1831_v46 = vpop.permute.xlu0 %1830 }
 0xc9f   : > { %v1836_v48 = vsel %vm658_vm1, %v1831_v46, 0 }
 0xca0   : > { %v1828_v49 = vpop.permute.xlu1 %1827 }
 0xca5   : > { %v3429_v42 = vpop.eup %3428 }
 0xca6   : > { %v1778_v44 = vmul.f32 %v3429_v42, %v3425_v34  ;;  %v1978_v42 = vld [vmem:[#allocation4 + $0x1b] ss:$0 sm:$0xff] }
 0xca7   : > { %v3431_v43 = vpop.eup %3430 }
 0xca8   : > { %v1779_v45 = vmul.f32 %v3431_v43, %v3427_v36 }
 0xcaa   : > { %v1780_v47 = vpack.c.bf16 %v1779_v45, %v1778_v44 }
 0xcac   : > { %3118 = vmatmul.mubr.msk.bf16.vlgmr.msra.gmra.mrb[24].mxu1 %vm706_vm2, %v1780_v47 }
 0xcad   : > { %3122 = vmatpush3.bf16.xpose.msra.mxu1 %v1836_v48  ;;  %3123 = vmatprep.mubr.msk.bf16.mxu1 %vm3536_vm0, %v3534_v0 }
 0xcae   : > { %3127 = vmatprep.subr.bf16.mxu1 %v3534_v0 }
 0xcb4   : > { %3124 = vmatmul.mubr.msk.bf16.vlgmr.msra.gmra.mrb[28].mxu1 %vm658_vm1, %v1828_v49 }
 0xcb5   : > { %3129 = vmatprep.mubr.msk.bf16.mxu1 %vm3536_vm0, %v3534_v0 }
 0xd7f   : > { %v4066_v50 = vpop.f32.mrb[24].mxu1 }
 0xd80   : > { %v3119_v51 = vpop.f32.mrb[25].mxu1 }
 0xd81   : > { %v4068_v52 = vpop.f32.mrb[26].mxu1 }
 0xd82   : > { %v3120_v53 = vpop.f32.mrb[27].mxu1 }
 0xd83   : > { %v3345_v53 = vld [vmem:[%s4222_s4 + $0x94] ss:$8 sps:$4 sm:$0xff]  }
 0xd87   : > { %v1872_v56 = vpop.f32.mrb[28].mxu1 }
 0xd88   : > { %v1873_v57 = vadd.f32 %v3815_v24, %v1872_v56  ;;  %v3125_v1 = vpop.f32.mrb[29].mxu1  ;;  %v3343_v56 = vld [vmem:[%s4222_s4 + $0x90] ss:$8 sps:$4 sm:$0xff]  }
 0xd89   : > { %v1875_v2 = vpop.f32.mrb[30].mxu1  ;;  %v3349_v1 = vld [vmem:[%s4222_s4 + $0xb0] ss:$8 sps:$4 sm:$0xff]  }
 0xd8a   : > { %v1876_v54 = vadd.f32 %v3815_v24, %v1875_v2  ;;  %v3126_v55 = vpop.f32.mrb[31].mxu1  ;;  %v1879_v3 = vsel %vm706_vm2, %v1873_v57, -inf  ;;  %v3354_v2 = vld [vmem:[%s4222_s4 + $0xc4] ss:$8 sps:$4 sm:$0xff]  }
 0xd8b   : > { %1880 = vmax.xlane.f32.xlu1 %v1879_v3  ;;  %v3357_v55 = vld [vmem:[%s4222_s4 + $0xd4] ss:$8 sps:$4 sm:$0xff]   ;;  %v3355_v3 = vld [vmem:[%s4222_s4 + $0xd0] ss:$8 sps:$4 sm:$0xff]  }
 0xd8c   : > { %v1882_v4 = vsel %vm706_vm2, %v1876_v54, -inf }
 0xd8d   : > { %1883 = vmax.xlane.f32.xlu0 %v1882_v4  ;;  %v3360_v4 = vld [vmem:[%s4222_s4 + $0xe4] ss:$8 sps:$4 sm:$0xff]  }
 0xe18   : > { %v1881_v5 = vpop.xlane.xlu1 %1880 }
 0xe19   : > { %v1885_v6 = vsub.f32 %v1873_v57, %v1881_v5  ;;  %v3351_v57 = vld [vmem:[%s4222_s4 + $0xb4] ss:$8 sps:$4 sm:$0xff]   ;;  %v3358_v5 = vld [vmem:[%s4222_s4 + $0xe0] ss:$8 sps:$4 sm:$0xff]  }
 0xe1a   : > { %v1884_v7 = vpop.xlane.xlu0 %1883 }
 0xe1b   : > { %v1887_v39 = vmul.f32 1.442695, %v1885_v6  ;;  %v1886_v40 = vsub.f32 %v1876_v54, %v1884_v7  ;;  %v3352_v54 = vld [vmem:[%s4222_s4 + $0xc0] ss:$8 sps:$4 sm:$0xff]   ;;  %v3363_v6 = vld [vmem:[%s4222_s4 + $0xf4] ss:$8 sps:$4 sm:$0xff]  }
 0xe1c   : > { %v3361_v7 = vld [vmem:[%s4222_s4 + $0xf0] ss:$8 sps:$4 sm:$0xff]  }
 0xe1d   : > { %3432 = vpow2.f32 %v1887_v39  ;;  %v1889_v8 = vmul.f32 1.442695, %v1886_v40 }
 0xe1f   : > { %3434 = vpow2.f32 %v1889_v8 }
 0xe27   : > { %v3433_v9 = vpop.eup %3432 }
 0xe28   : > { %v1891_v10 = vsel %vm706_vm2, %v3433_v9, 0.0 }
 0xe29   : > { %v3435_v11 = vpop.eup %3434  ;;  %1892 = vadd.xlane.f32.xlu0 %v1891_v10 }
 0xe2a   : > { %v1894_v24 = vsel %vm706_vm2, %v3435_v11, 0.0 }
 0xe2b   : > { %1895 = vadd.xlane.f32.xlu1 %v1894_v24 }
 0xe3f   : > { %1903 = vrot.lane.b32.xlu0 %v4041_v17, %s3537_s15  ;;  %v3333_v17 = vld [vmem:[%s4221_s3 + $0x48] sm:$0xff]  }
 0xe40   : > { %3136 = vmatpush3.bf16.msra.mxu0 %v3333_v17  ;;  %v2070_v17 = vld [vmem:[#allocation4 + $0x1c] ss:$0 sm:$0xff] }
 0xe41   : > { %3137 = vmatprep.subr.bf16.mxu0 %v3534_v0 }
 0xe44   : > { %3138 = vmatpush3.bf16.msra.mxu0 %v3334_v20 }
 0xe45   : > { %3139 = vmatprep.subr.bf16.mxu0 %v3534_v0 }
 0xeb6   : > { %v1893_v12 = vpop.xlane.xlu0 %1892 }
 0xeb7   : > { %3436 = vrcp.f32 %v1893_v12 }
 0xeb8   : > { %v1896_v13 = vpop.xlane.xlu1 %1895 }
 0xeb9   : > { %3438 = vrcp.f32 %v1896_v13 }
 0xeba   : > { %v1904_v14 = vpop.permute.xlu0 %1903 }
 0xebb   : > { %3128 = vmatpush3.bf16.msra.mxu1 %v1904_v14 }
 0xebc   : > { %2213 = vmatprep.subr.bf16.mxu1 %v3342_v41  ;;  %v3372_v41 = vld [vmem:[#allocation2 + $0xe0] sm:$0xff]  }
 0xec1   : > { %v3437_v15 = vpop.eup %3436 }
 0xec2   : > { %v1899_v58 = vmul.f32 %v3437_v15, %v3433_v9 }
 0xec3   : > { %v3439_v16 = vpop.eup %3438 }
 0xec4   : > { %v1900_v60 = vmul.f32 %v3439_v16, %v3435_v11 }
 0xec6   : > { %v1901_v18 = vpack.c.bf16 %v1900_v60, %v1899_v58 }
 0xec8   : > { %3130 = vmatmul.mubr.msk.bf16.vlgmr.msra.gmra.mrb[32].mxu1 %vm706_vm2, %v1901_v18 }
 0xec9   : > { %2245 = vmatprep.mubr.bf16.mxu1 %v3535_v26  ;;  %v3335_v26 = vld [vmem:[%s4221_s3 + $0x58] sm:$0xff]   ;;  %2214 = vmatpush1.bf16.msra.mxu1 %v3340_v38 }
 0xeca   : > { %3140 = vmatpush3.bf16.msra.mxu0 %v3335_v26  ;;  %2215 = vmatprep.subr.bf16.mxu1 %v3345_v53  ;;  %v3371_v38 = vld [vmem:[#allocation2 + $0x98] sm:$0xff]  }
 0xecb   : > { %3141 = vmatprep.subr.bf16.mxu0 %v3534_v0 }
 0xecd   : > { %2216 = vmatpush1.bf16.msra.mxu1 %v3343_v56 }
 0xece   : > { %3142 = vmatpush3.bf16.msra.mxu0 %v3336_v21 }
 0xecf   : > { %3143 = vmatprep.subr.bf16.mxu0 %v3534_v0 }
 0xed2   : > { %3144 = vmatpush3.bf16.msra.mxu0 %v3337_v22 }
 0xed3   : > { %3145 = vmatprep.subr.bf16.mxu0 %v3534_v0 }
 0xed6   : > { %3146 = vmatpush3.bf16.msra.mxu0 %v3338_v23 }
 0xed7   : > { %3147 = vmatprep.subr.bf16.mxu0 %v3534_v0 }
 0xeda   : > { %3148 = vmatpush3.bf16.msra.mxu0 %v3339_v25  ;;  %v2071_v25 = vld [vmem:[#allocation4 + $0x1d] ss:$0 sm:$0xff] }
 0xf9b   : > { %v1943_v27 = vpop.f32.mrb[32].mxu1 }
 0xf9c   : > { %v3131_v28 = vpop.f32.mrb[33].mxu1 }
 0xf9d   : > { %v1946_v29 = vpop.f32.mrb[34].mxu1 }
 0xf9e   : > { %v3215_v30 = vpack.i.bf16 %v1946_v29, %v1943_v27  ;;  %v3132_v31 = vpop.f32.mrb[35].mxu1 }
 0xf9f   : > { %v3364_v31 = vld [vmem:[#allocation2 + $0xc0] sm:$0xff]  }
 0xfa0   : > { %3216 = vrot.lane.b32.xlu1 %v3215_v30, %s3537_s15  ;;  %2994 = vmatprep.subr.bf16.mxu0 %v3364_v31 }
0x1012   : > { %v3217_v32 = vpop.permute.xlu1 %3216 }
0x1013   : > { %v3219_v33 = vunpack.i.h.bf16 %v3217_v32  ;;  %v3218_v34 = vunpack.i.l.bf16 %v3217_v32  ;;  %v3365_v32 = vld [vmem:[#allocation2 + $0x80] sm:$0xff]  }
0x1015   : > { %v1959_v35 = vsel %vm658_vm1, %v4068_v52, %v3219_v33  ;;  %v1958_v36 = vsel %vm658_vm1, %v4066_v50, %v3218_v34  ;;  %v3366_v33 = vld [vmem:[#allocation2 + $0xc8] sm:$0xff]  }
0x1016   : > { %v1960_v37 = vpack.c.bf16 %v1959_v35, %v1958_v36  ;;  %v3367_v34 = vld [vmem:[#allocation2 + $0x88] sm:$0xff]   ;;  %v3368_v35 = vld [vmem:[#allocation2 + $0xd0] sm:$0xff]  }
0x1017   : > { %v3369_v36 = vld [vmem:[#allocation2 + $0x90] sm:$0xff]  }
0x1018   : > { %3150 = vmatmul.mubr.bf16.vlgmr.msra.gmra.mrb[24].mxu0 %v1960_v37  ;;  %v3370_v37 = vld [vmem:[#allocation2 + $0xd8] sm:$0xff]  }
0x1019   : > { %2995 = vmatpush3.bf16.msra.mxu0 %v3365_v32 }
0x101a   : > { %2996 = vmatprep.subr.bf16.mxu0 %v3366_v33 }
0x101d   : > { %2997 = vmatpush3.bf16.msra.mxu0 %v3367_v34 }
0x101e   : > { %2998 = vmatprep.subr.bf16.mxu0 %v3368_v35 }
0x1021   : > { %2999 = vmatpush3.bf16.msra.mxu0 %v3369_v36  ;;  %v2327_v36 = vld [vmem:[#allocation4 + $0x1f] ss:$0 sm:$0xff] }
0x1022   : > { %3000 = vmatprep.subr.bf16.mxu0 %v3370_v37 }
0x1025   : > { %3001 = vmatpush3.bf16.msra.mxu0 %v3371_v38 }
0x1026   : > { %3002 = vmatprep.subr.bf16.mxu0 %v3372_v41 }
0x10eb   : > { %v2061_v43 = vpop.f32.mrb[24].mxu0 }
0x10ec   : > { %v2062_v44 = vadd.f32 %v2061_v43, %v1978_v42  ;;  %v3151_v45 = vpop.f32.mrb[25].mxu0  ;;  %v3374_v43 = vld [vmem:[#allocation2 + $0xe8] sm:$0xff]  }
0x10ed   : > { %v2064_v46 = vpop.f32.mrb[26].mxu0  ;;  %v3376_v45 = vld [vmem:[#allocation2 + $0xf0] sm:$0xff]  }
0x10ee   : > { %v2068_v47 = vadd.f32 %v2062_v44, %v4027_v61  ;;  %v2065_v48 = vadd.f32 %v2064_v46, %v1978_v42  ;;  %v3152_v49 = vpop.f32.mrb[27].mxu0  ;;  %v3348_v61 = vld [vmem:[%s4222_s4 + $0xa4] ss:$8 sps:$4 sm:$0xff]   ;;  %v3377_v46 = vld [vmem:[#allocation2 + $0xb0] sm:$0xff]  }
0x10ef   : > { %2217 = vmatprep.subr.bf16.mxu1 %v3348_v61  ;;  %v3373_v42 = vld [vmem:[#allocation2 + $0xa0] sm:$0xff]   ;;  %v3375_v44 = vld [vmem:[#allocation2 + $0xa8] sm:$0xff]  }
0x10f0   : > { %v2069_v50 = vadd.f32 %v2065_v48, %v4029_v63  ;;  %2072 = vadd.xlane.f32.xlu1 %v2068_v47  ;;  %v2078_v52 = vmul.f32 %v2068_v47, %v2068_v47  ;;  %v3346_v63 = vld [vmem:[%s4222_s4 + $0xa0] ss:$8 sps:$4 sm:$0xff]   ;;  %3003 = vmatpush3.bf16.msra.mxu0 %v3373_v42  ;;  %v3379_v48 = vld [vmem:[#allocation2 + $0xb8] sm:$0xff]  }
0x10f1   : > { %2218 = vmatpush1.bf16.msra.mxu1 %v3346_v63  ;;  %3004 = vmatprep.subr.bf16.mxu0 %v3374_v43  ;;  %v2121_v49 = vld [vmem:[#allocation4 + $0x1e] ss:$8 sm:$0x3] }
0x10f2   : > { %2074 = vadd.xlane.f32.xlu0 %v2069_v50  ;;  %v2079_v51 = vmul.f32 %v2069_v50, %v2069_v50  ;;  %2219 = vmatprep.subr.bf16.mxu1 %v3351_v57 }
0x10f4   : > { %2082 = vadd.xlane.f32.xlu1 %v2079_v51  ;;  %3005 = vmatpush3.bf16.msra.mxu0 %v3375_v44  ;;  %v2130_v51 = vrot.slane %v2121_v49, %v3789_v62 }
0x10f5   : > { %2220 = vmatpush1.bf16.msra.mxu1 %v3349_v1  ;;  %3006 = vmatprep.subr.bf16.mxu0 %v3376_v45 }
0x10f6   : > { %2080 = vadd.xlane.f32.xlu0 %v2078_v52  ;;  %2221 = vmatprep.subr.bf16.mxu1 %v3354_v2 }
0x10f8   : > { %3007 = vmatpush3.bf16.msra.mxu0 %v3377_v46 }
0x10f9   : > { %2222 = vmatpush1.bf16.msra.mxu1 %v3352_v54 }
0x10fa   : > { %2223 = vmatprep.subr.bf16.mxu1 %v3357_v55 }
0x10fd   : > { %2224 = vmatpush1.bf16.msra.mxu1 %v3355_v3 }
0x10fe   : > { %2225 = vmatprep.subr.bf16.mxu1 %v3360_v4 }
0x1101   : > { %2226 = vmatpush1.bf16.msra.mxu1 %v3358_v5 }
0x1102   : > { %2227 = vmatprep.subr.bf16.mxu1 %v3363_v6 }
0x1105   : > { %2228 = vmatpush1.bf16.msra.mxu1 %v3361_v7 }
0x1106   : > { %3153 = vmatprep.subr.bf16.mxu1 %v3534_v0 }
0x117d   : > { %v2073_v39 = vpop.xlane.xlu1 %2072 }
0x117e   : > { %v2076_v8 = vmul.f32 0.0078125, %v2073_v39 }
0x117f   : > { %v2075_v40 = vpop.xlane.xlu0 %2074 }
0x1180   : > { %v2077_v9 = vmul.f32 0.0078125, %v2075_v40  ;;  %v2086_v13 = vmul.f32 %v2076_v8, %v2076_v8  ;;  %v2090_v20 = vsub.f32 %v2068_v47, %v2076_v8  ;;  %v3378_v47 = vld [vmem:[#allocation2 + $0xf8] sm:$0xff]  }
0x1181   : > { %v2083_v10 = vpop.xlane.xlu1 %2082  ;;  %3008 = vmatprep.subr.bf16.mxu0 %v3378_v47 }
0x1182   : > { %v2087_v11 = vmul.f32 %v2077_v9, %v2077_v9  ;;  %v2085_v24 = vmul.f32 0.0078125, %v2083_v10  ;;  %v2091_v18 = vsub.f32 %v2069_v50, %v2077_v9  ;;  %3009 = vmatpush3.bf16.msra.mxu0 %v3379_v48  ;;  %v2126_v50 = vrot.slane %v2121_v49, %v3785_v59 }
0x1183   : > { %v2081_v12 = vpop.xlane.xlu0 %2080 }
0x1184   : > { %v2089_v14 = vsub.f32 %v2085_v24, %v2087_v11  ;;  %v2084_v15 = vmul.f32 0.0078125, %v2081_v12 }
0x1186   : > { %v2093_v16 = vadd.f32 1e-12, %v2089_v14  ;;  %v2088_v58 = vsub.f32 %v2084_v15, %v2086_v13 }
0x1188   : > { %3440 = vrsqrt.f32 %v2093_v16  ;;  %v2092_v60 = vadd.f32 1e-12, %v2088_v58 }
0x118a   : > { %3442 = vrsqrt.f32 %v2092_v60 }
0x1192   : > { %v3441_v19 = vpop.eup %3440 }
0x1193   : > { %v2097_v26 = vmul.f32 %v3441_v19, %v2091_v18 }
0x1194   : > { %v3443_v21 = vpop.eup %3442 }
0x1195   : > { %v2096_v22 = vmul.f32 %v3443_v21, %v2090_v20  ;;  %v2099_v23 = vmul.f32 %v2097_v26, %v2070_v17 }
0x1197   : > { %v2098_v27 = vmul.f32 %v2096_v22, %v2070_v17  ;;  %v4169_v29 = vadd.f32 %v2099_v23, %v2071_v25 }
0x1199   : > { %v4167_v28 = vadd.f32 %v2098_v27, %v2071_v25 }
0x119b   : > { %v2102_v30 = vpack.c.bf16 %v4169_v29, %v4167_v28 }
0x119d   : > { %2246 = vmatmul.mubr.bf16.vlgmr.msra.gmra.mrb[36].mxu1 %v2102_v30 }
0x119e   : > { %3169 = vmatprep.mubr.msk.bf16.mxu1 %vm3536_vm0, %v3534_v0 }
0x1270   : > { %v2247_v52 = vpop.f32.mrb[36].mxu1 }
0x1271   : > { %v2248_v53 = vadd.f32 %v2247_v52, %v2126_v50  ;;  %v2249_v56 = vpop.f32.mrb[37].mxu1  ;;  %v3384_v52 = vld [vmem:[%s4224_s6 + $0x20] sm:$0xff]  }
0x1272   : > { %v2250_v61 = vadd.f32 %v2249_v56, %v2130_v51  ;;  %v2251_v63 = vpop.f32.mrb[38].mxu1  ;;  %v3386_v56 = vld [vmem:[%s4224_s6 + $0x30] sm:$0xff]  }
0x1273   : > { %v2260_v57 = vmul.f32 0.044715, %v2248_v53  ;;  %v2252_v1 = vadd.f32 %v2251_v63, %v2126_v50  ;;  %v2253_v2 = vpop.f32.mrb[39].mxu1  ;;  %v2256_v20 = vmul.f32 0.5, %v2248_v53  ;;  %v3380_v50 = vld [vmem:[%s4224_s6] sm:$0xff]  }
0x1274   : > { %v2261_v54 = vmul.f32 0.044715, %v2250_v61  ;;  %v2254_v55 = vadd.f32 %v2253_v2, %v2130_v51  ;;  %v2257_v22 = vmul.f32 0.5, %v2250_v61  ;;  %3154 = vmatpush3.bf16.msra.mxu1 %v3380_v50  ;;  %v3381_v51 = vld [vmem:[%s4224_s6 + $0x8] sm:$0xff]  }
0x1275   : > { %v2264_v3 = vmul.f32 %v2260_v57, %v2248_v53  ;;  %v2262_v4 = vmul.f32 0.044715, %v2252_v1  ;;  %v2258_v26 = vmul.f32 0.5, %v2252_v1  ;;  %3155 = vmatprep.subr.bf16.mxu1 %v3534_v0 }
0x1276   : > { %v2265_v5 = vmul.f32 %v2261_v54, %v2250_v61  ;;  %v2263_v6 = vmul.f32 0.044715, %v2254_v55  ;;  %v2259_v23 = vmul.f32 0.5, %v2254_v55 }
0x1277   : > { %v2268_v7 = vmul.f32 %v2264_v3, %v2248_v53  ;;  %v2266_v39 = vmul.f32 %v2262_v4, %v2252_v1 }
0x1278   : > { %v2269_v40 = vmul.f32 %v2265_v5, %v2250_v61  ;;  %v2267_v59 = vmul.f32 %v2263_v6, %v2254_v55  ;;  %3156 = vmatpush3.bf16.msra.mxu1 %v3381_v51 }
0x1279   : > { %v2272_v8 = vadd.f32 %v2268_v7, %v2248_v53  ;;  %v2270_v62 = vmul.f32 %v2266_v39, %v2252_v1  ;;  %3157 = vmatprep.subr.bf16.mxu1 %v3534_v0  ;;  %v3385_v53 = vld [vmem:[%s4224_s6 + $0x28] sm:$0xff]  }
0x127a   : > { %v2271_v9 = vmul.f32 %v2267_v59, %v2254_v55  ;;  %v2273_v10 = vadd.f32 %v2269_v40, %v2250_v61  ;;  %v3387_v61 = vld [vmem:[%s4224_s6 + $0x38] sm:$0xff]  }
0x127b   : > { %v2276_v11 = vmul.f32 0.7978846, %v2272_v8  ;;  %v2274_v24 = vadd.f32 %v2270_v62, %v2252_v1  ;;  %v2467_v62 = vld [vmem:[#allocation4 + $0x30] ss:$0 sm:$0xff] }
0x127c   : > { %v2275_v12 = vadd.f32 %v2271_v9, %v2254_v55  ;;  %v2277_v13 = vmul.f32 0.7978846, %v2273_v10 }
0x127d   : > { %3444 = vtanh.f32 %v2276_v11  ;;  %v2278_v14 = vmul.f32 0.7978846, %v2274_v24 }
0x127e   : > { %v2279_v15 = vmul.f32 0.7978846, %v2275_v12  ;;  %3446 = vtanh.f32 %v2277_v13  ;;  %v2468_v13 = vld [vmem:[#allocation4 + $0x31] ss:$0 sm:$0xff] }
0x127f   : > { %3448 = vtanh.f32 %v2278_v14 }
0x1280   : > { %3450 = vtanh.f32 %v2279_v15 }
0x1287   : > { %v3445_v16 = vpop.eup %3444 }
0x1288   : > { %v3447_v58 = vpop.eup %3446  ;;  %v2284_v60 = vadd.f32 1.0, %v3445_v16 }
0x1289   : > { %v3449_v18 = vpop.eup %3448  ;;  %v2285_v19 = vadd.f32 1.0, %v3447_v58 }
0x128a   : > { %v3451_v17 = vpop.eup %3450  ;;  %v2286_v21 = vadd.f32 1.0, %v3449_v18  ;;  %v2288_v27 = vmul.f32 %v2284_v60, %v2256_v20  ;;  %v2516_v60 = vld [vmem:[#allocation4 + $0x32] ss:$0 sm:$0xff] }
0x128b   : > { %v2287_v25 = vadd.f32 1.0, %v3451_v17  ;;  %v2289_v31 = vmul.f32 %v2285_v19, %v2257_v22 }
0x128c   : > { %v2290_v30 = vmul.f32 %v2286_v21, %v2258_v26 }
0x128d   : > { %v2291_v32 = vmul.f32 %v2287_v25, %v2259_v23 }
0x128e   : > { %v2292_v33 = vpack.c.bf16 %v2290_v30, %v2288_v27 }
0x128f   : > { %v2293_v34 = vpack.c.bf16 %v2291_v32, %v2289_v31 }
0x1291   : > { %2456 = vmatprep.mubr.bf16.mxu0 %v2293_v34 }
0x1292   : > { %2457 = vmatmul.mubr.bf16.vlgmr.msra.gmra.mrb[28].mxu0 %v2292_v33 }
0x1365   : > { %v3010_v35 = vpop.f32.mrb[28].mxu0 }
0x1366   : > { %v3011_v37 = vpop.f32.mrb[29].mxu0 }
0x1367   : > { %v3012_v38 = vadd.f32 %v3011_v37, %v3010_v35  ;;  %v3013_v41 = vpop.f32.mrb[30].mxu0 }
0x1368   : > { %v3014_v42 = vpop.f32.mrb[31].mxu0 }
0x1369   : > { %v2459_v43 = vadd.f32 %v3012_v38, %v2327_v36  ;;  %v3015_v44 = vadd.f32 %v3014_v42, %v3013_v41 }
0x136b   : > { %v2462_v45 = vadd.f32 %v3015_v44, %v2327_v36  ;;  %v2465_v46 = vadd.f32 %v2459_v43, %v4167_v28  ;;  %v3382_v28 = vld [vmem:[%s4224_s6 + $0x10] sm:$0xff]  }
0x136c   : > { %3158 = vmatpush3.bf16.msra.mxu1 %v3382_v28 }
0x136d   : > { %2469 = vadd.xlane.f32.xlu0 %v2465_v46  ;;  %v2466_v47 = vadd.f32 %v2462_v45, %v4169_v29  ;;  %v2475_v48 = vmul.f32 %v2465_v46, %v2465_v46  ;;  %3159 = vmatprep.subr.bf16.mxu1 %v3534_v0  ;;  %v3383_v29 = vld [vmem:[%s4224_s6 + $0x18] sm:$0xff]  }
0x136f   : > { %2471 = vadd.xlane.f32.xlu1 %v2466_v47  ;;  %v2476_v49 = vmul.f32 %v2466_v47, %v2466_v47 }
0x1370   : > { %3160 = vmatpush3.bf16.msra.mxu1 %v3383_v29 }
0x1371   : > { %2477 = vadd.xlane.f32.xlu0 %v2475_v48  ;;  %3161 = vmatprep.subr.bf16.mxu1 %v3534_v0 }
0x1373   : > { %2479 = vadd.xlane.f32.xlu1 %v2476_v49 }
0x1374   : > { %3162 = vmatpush3.bf16.msra.mxu1 %v3384_v52 }
0x1375   : > { %3163 = vmatprep.subr.bf16.mxu1 %v3534_v0 }
0x1378   : > { %3164 = vmatpush3.bf16.msra.mxu1 %v3385_v53 }
0x1379   : > { %3165 = vmatprep.subr.bf16.mxu1 %v3534_v0 }
0x137c   : > { %3166 = vmatpush3.bf16.msra.mxu1 %v3386_v56 }
0x137d   : > { %3167 = vmatprep.subr.bf16.mxu1 %v3534_v0 }
0x1380   : > { %3168 = vmatpush3.bf16.msra.mxu1 %v3387_v61 }
0x13fa   : > { %v2470_v63 = vpop.xlane.xlu0 %2469 }
0x13fb   : > { %v2473_v57 = vmul.f32 0.0078125, %v2470_v63 }
0x13fc   : > { %v2472_v1 = vpop.xlane.xlu1 %2471 }
0x13fd   : > { %v2474_v2 = vmul.f32 0.0078125, %v2472_v1  ;;  %v2483_v55 = vmul.f32 %v2473_v57, %v2473_v57  ;;  %v2487_v8 = vsub.f32 %v2465_v46, %v2473_v57 }
0x13fe   : > { %v2478_v54 = vpop.xlane.xlu0 %2477 }
0x13ff   : > { %v2481_v3 = vmul.f32 0.0078125, %v2478_v54  ;;  %v2484_v5 = vmul.f32 %v2474_v2, %v2474_v2  ;;  %v2488_v9 = vsub.f32 %v2466_v47, %v2474_v2 }
0x1400   : > { %v2480_v4 = vpop.xlane.xlu1 %2479 }
0x1401   : > { %v2485_v6 = vsub.f32 %v2481_v3, %v2483_v55  ;;  %v2482_v7 = vmul.f32 0.0078125, %v2480_v4 }
0x1403   : > { %v2489_v39 = vadd.f32 1e-12, %v2485_v6  ;;  %v2486_v40 = vsub.f32 %v2482_v7, %v2484_v5 }
0x1405   : > { %3452 = vrsqrt.f32 %v2489_v39  ;;  %v2490_v59 = vadd.f32 1e-12, %v2486_v40 }
0x1407   : > { %3454 = vrsqrt.f32 %v2490_v59 }
0x140f   : > { %v3453_v0 = vpop.eup %3452 }
0x1410   : > { %v2493_v10 = vmul.f32 %v3453_v0, %v2487_v8 }
0x1411   : > { %v3455_v11 = vpop.eup %3454 }
0x1412   : > { %v2494_v24 = vmul.f32 %v3455_v11, %v2488_v9  ;;  %v2495_v12 = vmul.f32 %v2493_v10, %v2467_v62 }
0x1414   : > { %v2496_v14 = vmul.f32 %v2494_v24, %v2467_v62  ;;  %v2497_v15 = vadd.f32 %v2495_v12, %v2468_v13 }
0x1416   : > { %v2498_v16 = vadd.f32 %v2496_v14, %v2468_v13 }
0x1418   : > { %v2499_v58 = vpack.c.bf16 %v2498_v16, %v2497_v15 }
0x141a   : > { %3170 = vmatmul.mubr.bf16.vlgmr.msra.gmra.mrb[40].mxu1 %v2499_v58 }
0x14ed   : > { %v2599_v18 = vpop.f32.mrb[40].mxu1 }
0x14ee   : > { %v2600_v19 = vadd.f32 %v2599_v18, %v2516_v60  ;;  %v3171_v17 = vpop.f32.mrb[41].mxu1 }
0x14ef   : > { %v2602_v20 = vpop.f32.mrb[42].mxu1 }
0x14f0   : > { %2606 = vst [vmem:[%s349_s29] sm:$0xff] %v2600_v19  ;;  %v2603_v26 = vadd.f32 %v2602_v20, %v2516_v60  ;;  %v3172_v21 = vpop.f32.mrb[43].mxu1 }
0x14f2   : > { %2607 = vst [vmem:[%s349_s29 + $0x8] sm:$0xff] %v2603_v26 }
0x14f3 PF: > { %s20_s27 = sadd.s32 1, %s3526_s27  }
0x14f4   : > { %p17_p5 = scmp.ge.s32.totalorder %s20_s27, 4  }
0x14f6   :  { %19 = sbr.rel (!%p17_p5) target bundleno = 2 (0x2), region = 102 }
0x14fd   :  { %2629 = vsyncpa [#allocation3], 1 }
0x14fe   :  { %2631 = vsyncpa [#allocation3 + $0x1], 1 }
0x14ff   :  { %2632 = vsyncpa [#allocation5], 1 }

</bundles_post_ra>
